<compile_context>
chip_gen: v6e
topology: v6e:2x2x1
jax: 0.10.0
libtpu: 0.0.40
codegen_flags: <defaults>
</compile_context>

<pallas_src>
import functools

import jax
import jax.numpy as jnp
from jax import lax
from jax.experimental import pallas as pl
from jax.experimental.pallas import tpu as pltpu

NEG_SLOPE = 0.01          # nn.LeakyReLU default
BN_EPS = 1e-5             # nn.BatchNorm2d default
COMPUTE_DTYPE = jnp.bfloat16   # MXU inputs / inter-layer activations (f32 accumulation)


@functools.lru_cache(maxsize=None)
def _vmem_limit_bytes():
    """Generation-aware scoped-VMEM cap (~3/4 of physical, capped at 100 MiB)."""
    cap = 64 * 1024 * 1024  # safe default (v7x-sized) if the query fails
    try:
        info = pltpu.get_tpu_info()
        for name in ("vmem_capacity_bytes", "vmem_size_bytes", "vmem_bytes"):
            v = getattr(info, name, None)
            if v:
                cap = int(v)
                break
    except Exception:
        pass
    return int(min(cap * 3 // 4, 100 * 1024 * 1024))


def _pick_tile(dim, cands=(512, 256, 128)):
    for c in cands:
        if dim >= c and dim % c == 0:
            return c
    return dim   # fall back to the full (untiled) dimension


# ----------------------- fc: K/N-tiled matmul (+bias, +ReLU) ---------------------------
def _linear_kernel(x_ref, w_ref, b_ref, o_ref, acc_ref, *, activation):
    @pl.when(pl.program_id(1) == 0)
    def _init():
        acc_ref[...] = jnp.zeros_like(acc_ref)

    acc_ref[...] += jnp.dot(x_ref[...], w_ref[...],
                            preferred_element_type=jnp.float32)

    @pl.when(pl.program_id(1) == pl.num_programs(1) - 1)
    def _finalize():
        y = acc_ref[...] + b_ref[...]
        if activation == "relu":
            y = jnp.maximum(y, 0.0)
        o_ref[...] = y.astype(o_ref.dtype)


def pallas_linear(x, w, b2, activation="none", out_dtype=jnp.float32):
    m, k = x.shape
    k2, n = w.shape
    assert k == k2 and b2.shape == (1, n)
    tn = _pick_tile(n)
    tk = _pick_tile(k)
    grid = (n // tn, k // tk)
    return pl.pallas_call(
        functools.partial(_linear_kernel, activation=activation),
        out_shape=jax.ShapeDtypeStruct((m, n), out_dtype),
        grid=grid,
        in_specs=[
            pl.BlockSpec((m, tk), lambda j, kk: (0, kk)),
            pl.BlockSpec((tk, tn), lambda j, kk: (kk, j)),
            pl.BlockSpec((1, tn), lambda j, kk: (0, j)),
        ],
        out_specs=pl.BlockSpec((m, tn), lambda j, kk: (0, j)),
        scratch_shapes=[pltpu.VMEM((m, tn), jnp.float32)],
        compiler_params=pltpu.CompilerParams(
            dimension_semantics=("parallel", "arbitrary"),
            vmem_limit_bytes=_vmem_limit_bytes()),
    )(x, w, b2)


# ------- ConvTranspose2d(k=4, s=2, p=1) + BatchNorm(eval) + LeakyReLU, per (n, a) -------
def _matmul_and_scatter(x_ref, wall_ref, zp_ref, a, Hin, Win, k8):
    # One matmul per (batch, subpixel-row a): all 8 relevant taps at once
    # (BN scale already folded into the wall columns).
    z = jnp.dot(x_ref[0], wall_ref[0],
                preferred_element_type=jnp.float32)            # (Hin*Win, k8)
    # Re-zero the halo every step: cheap, required because the interior placement
    # alternates with `a`, and keeps the scratch safe under megacore scheduling.
    zp_ref[0:1, :, :] = jnp.zeros((1, Win + 2, k8), jnp.float32)
    zp_ref[Hin:Hin + 1, :, :] = jnp.zeros((1, Win + 2, k8), jnp.float32)
    zp_ref[:, 0:1, :] = jnp.zeros((Hin + 1, 1, k8), jnp.float32)
    zp_ref[:, Win + 1:Win + 2, :] = jnp.zeros((Hin + 1, 1, k8), jnp.float32)
    # Interior store.  Placing it at row offset (1 - a) makes every subsequent
    # plane read a fully static slice.
    if Win % 8 == 0:
        # single vectorized block store (sublane-aligned reshape)
        zp_ref[pl.ds(1 - a, Hin), 1:Win + 1, :] = z.reshape(Hin, Win, k8)
    else:
        # tiny-width early stages only: per-row stores (still static slices of z)
        for m in range(Hin):
            zp_ref[m + 1 - a, 1:Win + 1, :] = z[m * Win:(m + 1) * Win, :]


def _plane_acc(zp_ref, b, Hin, Win, cout):
    # Subpixel column b: 4 whole-plane shifted slices (all offsets static).
    acc = None
    for dy in (0, 1):
        for dx in (0, 1):
            t = (b * 2 + dy) * 2 + dx
            term = zp_ref[dy:dy + Hin, b + dx:b + dx + Win, t * cout:(t + 1) * cout]
            acc = term if acc is None else acc + term
    return acc


def _convt_kernel(x_ref, wall_ref, shift_ref, o_ref, zp_ref, *, Hin, Win, cout):
    # x_ref:   (1, Hin*Win, Cin)   NHWC-flattened activation (bf16)
    # wall:    (1, Cin, 8*Cout)    the 8 taps used by subpixel-row a, BN scale folded
    # shift:   (1, Cout)           folded conv-bias + eval-mode BN shift (f32)
    # o_ref:   (1, Hin, 1, Win, 2*Cout)  == rows 2m+a of the NHWC image
    a = pl.program_id(1)
    _matmul_and_scatter(x_ref, wall_ref, zp_ref, a, Hin, Win, 8 * cout)
    shift = shift_ref[...]
    halves = []
    for b in (0, 1):
        y = _plane_acc(zp_ref, b, Hin, Win, cout) + shift
        y = jnp.where(y > 0.0, y, NEG_SLOPE * y)               # LeakyReLU(0.01)
        halves.append(y)
    # one lane-dense, full-width store per grid step
    o_ref[0, :, 0, :, :] = jnp.concatenate(halves, axis=-1).astype(o_ref.dtype)


def _convt_final_kernel(x_ref, wall_ref, shift_ref, wf_ref, bf_ref, o_ref, zp_ref,
                        *, Hin, Win, cout):
    # Same as above, with the 1x1 conv (Cout -> 3) + bias + tanh fused in.
    a = pl.program_id(1)
    _matmul_and_scatter(x_ref, wall_ref, zp_ref, a, Hin, Win, 8 * cout)
    shift = shift_ref[...]
    wf = wf_ref[...]                                           # (Cout, 3) f32
    bf = bf_ref[...]                                           # (1, 3)    f32
    halves = []
    for b in (0, 1):
        y = _plane_acc(zp_ref, b, Hin, Win, cout) + shift
        y = jnp.where(y > 0.0, y, NEG_SLOPE * y)
        y2 = y.reshape(Hin * Win, cout)
        # 3-channel projection on the VPU/XLU (avoid a 3-column MXU matmul)
        chans = [jnp.sum(y2 * wf[:, c], axis=-1, keepdims=True) for c in range(3)]
        r = jnp.concatenate(chans, axis=-1) + bf               # (HW, 3)
        halves.append(jnp.tanh(r))
    o_ref[0, 0, :, :] = jnp.concatenate(halves, axis=-1).astype(o_ref.dtype)


def _convt_layer(x_flat, Hin, Win, wall, shift, out_dtype):
    N, HW, Cin = x_flat.shape
    assert HW == Hin * Win
    Cout = wall.shape[2] // 8
    k8 = 8 * Cout
    return pl.pallas_call(
        functools.partial(_convt_kernel, Hin=Hin, Win=Win, cout=Cout),
        out_shape=jax.ShapeDtypeStruct((N, Hin, 2, Win, 2 * Cout), out_dtype),
        grid=(N, 2),
        in_specs=[
            pl.BlockSpec((1, HW, Cin), lambda n, a: (n, 0, 0)),
            pl.BlockSpec((1, Cin, k8), lambda n, a: (a, 0, 0)),
            pl.BlockSpec((1, Cout), lambda n, a: (0, 0)),
        ],
        out_specs=pl.BlockSpec((1, Hin, 1, Win, 2 * Cout),
                               lambda n, a: (n, 0, a, 0, 0)),
        scratch_shapes=[pltpu.VMEM((Hin + 1, Win + 2, k8), jnp.float32)],
        compiler_params=pltpu.CompilerParams(
            dimension_semantics=("parallel", "parallel"),
            vmem_limit_bytes=_vmem_limit_bytes()),
    )(x_flat, wall, shift)


def _convt_final_layer(x_flat, Hin, Win, wall, shift, wf, bf2):
    N, HW, Cin = x_flat.shape
    assert HW == Hin * Win
    Cout = wall.shape[2] // 8
    k8 = 8 * Cout
    return pl.pallas_call(
        functools.partial(_convt_final_kernel, Hin=Hin, Win=Win, cout=Cout),
        out_shape=jax.ShapeDtypeStruct((N, 2, HW, 6), jnp.float32),
        grid=(N, 2),
        in_specs=[
            pl.BlockSpec((1, HW, Cin), lambda n, a: (n, 0, 0)),
            pl.BlockSpec((1, Cin, k8), lambda n, a: (a, 0, 0)),
            pl.BlockSpec((1, Cout), lambda n, a: (0, 0)),
            pl.BlockSpec((Cout, 3), lambda n, a: (0, 0)),
            pl.BlockSpec((1, 3), lambda n, a: (0, 0)),
        ],
        out_specs=pl.BlockSpec((1, 1, HW, 6), lambda n, a: (n, a, 0, 0)),
        scratch_shapes=[pltpu.VMEM((Hin + 1, Win + 2, k8), jnp.float32)],
        compiler_params=pltpu.CompilerParams(
            dimension_semantics=("parallel", "parallel"),
            vmem_limit_bytes=_vmem_limit_bytes()),
    )(x_flat, wall, shift, wf, bf2)


# ------------------------------------ parameters ----------------------------------------
def init_params(key, img_size, upsamplings, latent_size, linear_hidden_size, up_channels):
    img_down = img_size // 2 ** upsamplings
    if img_down * 2 ** upsamplings != img_size:
        raise ValueError("Final img size != img_size after decoding.")
    up_start = img_down ** 2 * linear_hidden_size
    kit = iter(jax.random.split(key, 64))

    def nrm(shape, s=0.05):
        return s * jax.random.normal(next(kit), shape, jnp.float32)

    params = {}
    if latent_size < up_start // 2:
        params["fc"] = [
            (nrm((latent_size, up_start // 2)), nrm((up_start // 2,))),
            (nrm((up_start // 2, up_start)), nrm((up_start,))),
        ]
    else:
        params["fc"] = [(nrm((latent_size, up_start)), nrm((up_start,)))]

    hidden_dims = [up_channels * 2 ** i for i in range(upsamplings)][::-1]
    prev = linear_hidden_size
    convs = []
    for nxt in hidden_dims:
        convs.append(dict(
            w=nrm((prev, nxt, 4, 4)),   # torch ConvTranspose2d weight layout (Cin, Cout, kh, kw)
            b=nrm((nxt,)),
            gamma=1.0 + nrm((nxt,)),
            beta=nrm((nxt,)),
            mean=nrm((nxt,)),
            var=1.0 + jnp.abs(nrm((nxt,))),
        ))
        prev = nxt
    params["convs"] = convs
    params["final"] = (nrm((up_channels, 3)), nrm((3,)))   # 1x1 conv as (Cin, 3) matmul
    return params


def _nhwc_col_perm(C0, d):
    # Column permutation turning the last fc output from NCHW-flat (c,h,w) order into
    # NHWC-flat (h,w,c) order -> the activation itself is never transposed.
    j = jnp.arange(d * d * C0)
    hw = j // C0
    c = j % C0
    return c * (d * d) + hw


def prepare_params(params, cfg, compute_dtype=COMPUTE_DTYPE):
    """One-time weight preprocessing (hoisted out of the jitted forward)."""
    d = cfg["img_size"] // 2 ** cfg["upsamplings"]
    C0 = cfg["linear_hidden_size"]

    fc = []
    n_fc = len(params["fc"])
    for i, (w, b) in enumerate(params["fc"]):
        if i == n_fc - 1:
            perm = _nhwc_col_perm(C0, d)
            w = w[:, perm]
            b = b[perm]
        fc.append((w.astype(compute_dtype), b.reshape(1, -1).astype(jnp.float32)))

    convs = []
    for layer in params["convs"]:
        w_pt = layer["w"]                                # (Cin, Cout, 4, 4)
        Cout = w_pt.shape[1]
        scale = layer["gamma"] / jnp.sqrt(layer["var"] + BN_EPS)
        shift = (layer["b"] - layer["mean"]) * scale + layer["beta"]
        planes = []
        for a in (0, 1):
            groups = []
            for b_ in (0, 1):
                for dy in (0, 1):
                    for dx in (0, 1):
                        groups.append(w_pt[:, :, 3 - a - 2 * dy, 3 - b_ - 2 * dx] * scale)
            planes.append(jnp.concatenate(groups, axis=1))   # (Cin, 8*Cout)
        wall = jnp.stack(planes, axis=0).astype(compute_dtype)  # (2, Cin, 8*Cout)
        convs.append(dict(wall=wall,
                          shift=shift.reshape(1, Cout).astype(jnp.float32)))

    wf, bf = params["final"]
    return dict(fc=fc, convs=convs,
                final_w=wf.astype(jnp.float32),
                final_b=bf.reshape(1, 3).astype(jnp.float32))


# ------------------------------------ forward pass --------------------------------------
def decoder_forward(embed, prep, cfg):
    d = cfg["img_size"] // 2 ** cfg["upsamplings"]
    C0 = cfg["linear_hidden_size"]
    N = embed.shape[0]

    fc = prep["fc"]
    x = embed.astype(COMPUTE_DTYPE)
    for i, (w, b2) in enumerate(fc):
        act = "relu" if i < len(fc) - 1 else "none"
        x = pallas_linear(x, w, b2, activation=act, out_dtype=COMPUTE_DTYPE)

    # NHWC-flattened activation (byte-identical view; no transpose / pad glue)
    x = x.reshape(N, d * d, C0)
    H = W = d

    convs = prep["convs"]
    assert len(convs) >= 1
    for li, layer in enumerate(convs):
        if li == len(convs) - 1:
            out = _convt_final_layer(x, H, W, layer["wall"], layer["shift"],
                                     prep["final_w"], prep["final_b"])
            # out[n, a, m*W + w, b*3 + c] == img[n, c, 2m+a, 2w+b]; tiny final relayout
            out = out.reshape(N, 2, H, W, 2, 3)
            img = jnp.transpose(out, (0, 5, 2, 1, 3, 4)).reshape(N, 3, 2 * H, 2 * W)
            return img
        Cout = layer["wall"].shape[2] // 8
        out5 = _convt_layer(x, H, W, layer["wall"], layer["shift"],
                            out_dtype=COMPUTE_DTYPE)           # (N, H, 2, W, 2*Cout)
        x = out5.reshape(N, (2 * H) * (2 * W), Cout)           # free NHWC view
        H, W = 2 * H, 2 * W


# ------------------------------- pure-JAX reference -------------------------------------
def decoder_reference(embed, params, cfg):
    img_down = cfg["img_size"] // 2 ** cfg["upsamplings"]
    C0 = cfg["linear_hidden_size"]
    x = embed
    nfc = len(params["fc"])
    for i, (w, b) in enumerate(params["fc"]):
        x = jnp.dot(x, w, precision=lax.Precision.HIGHEST) + b
        if i < nfc - 1:
            x = jnp.maximum(x, 0.0)
    x = x.reshape(-1, C0, img_down, img_down)
    for layer in params["convs"]:
        w_oihw = jnp.transpose(layer["w"], (1, 0, 2, 3))[:, :, ::-1, ::-1]
        x = lax.conv_general_dilated(
            x, w_oihw, window_strides=(1, 1), padding=((2, 2), (2, 2)),
            lhs_dilation=(2, 2), dimension_numbers=("NCHW", "OIHW", "NCHW"),
            precision=lax.Precision.HIGHEST)
        x = x + layer["b"][None, :, None, None]
        x = (x - layer["mean"][None, :, None, None]) / \
            jnp.sqrt(layer["var"] + BN_EPS)[None, :, None, None]
        x = x * layer["gamma"][None, :, None, None] + layer["beta"][None, :, None, None]
        x = jnp.where(x > 0, x, NEG_SLOPE * x)
    wf, bf = params["final"]
    x = jnp.einsum("nchw,co->nohw", x, wf,
                   precision=lax.Precision.HIGHEST) + bf[None, :, None, None]
    return jnp.tanh(x)


if __name__ == "__main__":
    cfg = dict(img_size=16, upsamplings=2, latent_size=32,
               linear_hidden_size=32, up_channels=8)

    key = jax.random.PRNGKey(0)
    pkey, xkey = jax.random.split(key)
    params = init_params(pkey, **cfg)
    embed = jax.random.normal(xkey, (2, cfg["latent_size"]), jnp.float32)

    prep = prepare_params(params, cfg)        # one-time weight preprocessing (not jitted)

    fwd = jax.jit(lambda e, p: decoder_forward(e, p, cfg))
    out = jax.block_until_ready(fwd(embed, prep))

    assert out.shape == (2, 3, cfg["img_size"], cfg["img_size"]), out.shape

    ref = decoder_reference(embed, params, cfg)
    # bf16 MXU inputs (f32 accumulation) vs HIGHEST-precision f32 reference.
    if not jnp.allclose(out.astype(jnp.float32), ref, atol=2.5e-2, rtol=2.5e-2):
        raise RuntimeError(
            f"mismatch vs reference: max abs err = {float(jnp.max(jnp.abs(out - ref)))}")

    print("KERNEL_OK")
</pallas_src>

<mosaic_0001>
module attributes {stable_mosaic.version = 11 : i64} {
  func.func @_linear_kernel(%arg0: i32, %arg1: i32, %arg2: memref<2x256xbf16, #tpu.memory_space<vmem>>, %arg3: memref<256x512xbf16, #tpu.memory_space<vmem>>, %arg4: memref<1x512xf32, #tpu.memory_space<vmem>>, %arg5: memref<2x512xbf16, #tpu.memory_space<vmem>>, %arg6: memref<2x512xf32, #tpu.memory_space<vmem>>) attributes {dimension_semantics = [#tpu.dimension_semantics<parallel>, #tpu.dimension_semantics<arbitrary>], iteration_bounds = array<i64: 1, 1>, scalar_prefetch = 0 : i64, scratch_operands = 1 : i64, tpu.core_type = #tpu.core_type<tc>, window_params = [{transform_indices = @transform_0, window_bounds = array<i64: 2, 256>}, {transform_indices = @transform_1, window_bounds = array<i64: 256, 512>}, {transform_indices = @transform_2, window_bounds = array<i64: 1, 512>}, {transform_indices = @transform_3, window_bounds = array<i64: 2, 512>}]} {
    %c0_i32 = arith.constant 0 : i32
    %0 = arith.cmpi eq, %arg1, %c0_i32 : i32
    %1 = arith.extui %0 : i1 to i32
    %c0_i32_0 = arith.constant 0 : i32
    %2 = arith.cmpi ne, %1, %c0_i32_0 : i32
    scf.if %2 {
      %cst_10 = arith.constant 0.000000e+00 : f32
      %12 = vector.broadcast %cst_10 : f32 to vector<2x512xf32>
      %c0_11 = arith.constant 0 : index
      %c0_12 = arith.constant 0 : index
      %13 = vector.load %arg6[%c0_11, %c0_12] : memref<2x512xf32, #tpu.memory_space<vmem>>, vector<2x512xf32>
      tpu.vector_store %arg6[%c0_11, %c0_12], %12 {strides = array<i32>} : memref<2x512xf32, #tpu.memory_space<vmem>>, vector<2x512xf32>,
    } else {
    }
    %c0 = arith.constant 0 : index
    %c0_1 = arith.constant 0 : index
    %3 = vector.load %arg6[%c0, %c0_1] : memref<2x512xf32, #tpu.memory_space<vmem>>, vector<2x512xf32>
    %c0_2 = arith.constant 0 : index
    %c0_3 = arith.constant 0 : index
    %4 = vector.load %arg2[%c0_2, %c0_3] : memref<2x256xbf16, #tpu.memory_space<vmem>>, vector<2x256xbf16>
    %c0_4 = arith.constant 0 : index
    %c0_5 = arith.constant 0 : index
    %5 = vector.load %arg3[%c0_4, %c0_5] : memref<256x512xbf16, #tpu.memory_space<vmem>>, vector<256x512xbf16>
    %cst = arith.constant dense<0.000000e+00> : vector<2x512xf32>
    %6 = tpu.matmul %4, %5, %cst {dimension_numbers = #tpu.dot_dimension_numbers<[1], [0], [0], [1], [0, 0, 1, 1], [], []>} : vector<2x256xbf16>, vector<256x512xbf16>, vector<2x512xf32> -> vector<2x512xf32>
    %7 = arith.addf %3, %6 : vector<2x512xf32>
    %c0_6 = arith.constant 0 : index
    %c0_7 = arith.constant 0 : index
    %8 = vector.load %arg6[%c0_6, %c0_7] : memref<2x512xf32, #tpu.memory_space<vmem>>, vector<2x512xf32>
    tpu.vector_store %arg6[%c0_6, %c0_7], %7 {strides = array<i32>} : memref<2x512xf32, #tpu.memory_space<vmem>>, vector<2x512xf32>,
    %c0_i32_8 = arith.constant 0 : i32
    %9 = arith.cmpi eq, %arg1, %c0_i32_8 : i32
    %10 = arith.extui %9 : i1 to i32
    %c0_i32_9 = arith.constant 0 : i32
    %11 = arith.cmpi ne, %10, %c0_i32_9 : i32
    scf.if %11 {
      %c0_10 = arith.constant 0 : index
      %c0_11 = arith.constant 0 : index
      %12 = vector.load %arg6[%c0_10, %c0_11] : memref<2x512xf32, #tpu.memory_space<vmem>>, vector<2x512xf32>
      %c0_12 = arith.constant 0 : index
      %c0_13 = arith.constant 0 : index
      %13 = vector.load %arg4[%c0_12, %c0_13] : memref<1x512xf32, #tpu.memory_space<vmem>>, vector<1x512xf32>
      %14 = vector.broadcast %13 : vector<1x512xf32> to vector<2x512xf32>
      %15 = arith.addf %12, %14 : vector<2x512xf32>
      %16 = arith.truncf %15 : vector<2x512xf32> to vector<2x512xbf16>
      %c0_14 = arith.constant 0 : index
      %c0_15 = arith.constant 0 : index
      %17 = vector.load %arg5[%c0_14, %c0_15] : memref<2x512xbf16, #tpu.memory_space<vmem>>, vector<2x512xbf16>
      tpu.vector_store %arg5[%c0_14, %c0_15], %16 {strides = array<i32>} : memref<2x512xbf16, #tpu.memory_space<vmem>>, vector<2x512xbf16>,
    } else {
    }
    return
  }
  func.func @transform_0(%arg0: i32, %arg1: i32) -> (i32, i32) {
    %c0_i32 = arith.constant 0 : i32
    %c0_i32_0 = arith.constant 0 : i32
    return %c0_i32, %arg1 : i32, i32
  }
  func.func @transform_1(%arg0: i32, %arg1: i32) -> (i32, i32) {
    %c0_i32 = arith.constant 0 : i32
    return %arg1, %arg0 : i32, i32
  }
  func.func @transform_2(%arg0: i32, %arg1: i32) -> (i32, i32) {
    %c0_i32 = arith.constant 0 : i32
    %c0_i32_0 = arith.constant 0 : i32
    return %c0_i32, %arg0 : i32, i32
  }
  func.func @transform_3(%arg0: i32, %arg1: i32) -> (i32, i32) {
    %c0_i32 = arith.constant 0 : i32
    %c0_i32_0 = arith.constant 0 : i32
    return %c0_i32, %arg0 : i32, i32
  }
}

module attributes {stable_mosaic.version = 11 : i64} {
  func.func @_linear_kernel(%arg0: i32, %arg1: i32, %arg2: memref<2x32xbf16, #tpu.memory_space<vmem>>, %arg3: memref<32x256xbf16, #tpu.memory_space<vmem>>, %arg4: memref<1x256xf32, #tpu.memory_space<vmem>>, %arg5: memref<2x256xbf16, #tpu.memory_space<vmem>>, %arg6: memref<2x256xf32, #tpu.memory_space<vmem>>) attributes {dimension_semantics = [#tpu.dimension_semantics<parallel>, #tpu.dimension_semantics<arbitrary>], iteration_bounds = array<i64: 1, 1>, scalar_prefetch = 0 : i64, scratch_operands = 1 : i64, tpu.core_type = #tpu.core_type<tc>, window_params = [{transform_indices = @transform_0, window_bounds = array<i64: 2, 32>}, {transform_indices = @transform_1, window_bounds = array<i64: 32, 256>}, {transform_indices = @transform_2, window_bounds = array<i64: 1, 256>}, {transform_indices = @transform_3, window_bounds = array<i64: 2, 256>}]} {
    %c0_i32 = arith.constant 0 : i32
    %0 = arith.cmpi eq, %arg1, %c0_i32 : i32
    %1 = arith.extui %0 : i1 to i32
    %c0_i32_0 = arith.constant 0 : i32
    %2 = arith.cmpi ne, %1, %c0_i32_0 : i32
    scf.if %2 {
      %cst_10 = arith.constant 0.000000e+00 : f32
      %12 = vector.broadcast %cst_10 : f32 to vector<2x256xf32>
      %c0_11 = arith.constant 0 : index
      %c0_12 = arith.constant 0 : index
      %13 = vector.load %arg6[%c0_11, %c0_12] : memref<2x256xf32, #tpu.memory_space<vmem>>, vector<2x256xf32>
      tpu.vector_store %arg6[%c0_11, %c0_12], %12 {strides = array<i32>} : memref<2x256xf32, #tpu.memory_space<vmem>>, vector<2x256xf32>,
    } else {
    }
    %c0 = arith.constant 0 : index
    %c0_1 = arith.constant 0 : index
    %3 = vector.load %arg6[%c0, %c0_1] : memref<2x256xf32, #tpu.memory_space<vmem>>, vector<2x256xf32>
    %c0_2 = arith.constant 0 : index
    %c0_3 = arith.constant 0 : index
    %4 = vector.load %arg2[%c0_2, %c0_3] : memref<2x32xbf16, #tpu.memory_space<vmem>>, vector<2x32xbf16>
    %c0_4 = arith.constant 0 : index
    %c0_5 = arith.constant 0 : index
    %5 = vector.load %arg3[%c0_4, %c0_5] : memref<32x256xbf16, #tpu.memory_space<vmem>>, vector<32x256xbf16>
    %cst = arith.constant dense<0.000000e+00> : vector<2x256xf32>
    %6 = tpu.matmul %4, %5, %cst {dimension_numbers = #tpu.dot_dimension_numbers<[1], [0], [0], [1], [0, 0, 1, 1], [], []>} : vector<2x32xbf16>, vector<32x256xbf16>, vector<2x256xf32> -> vector<2x256xf32>
    %7 = arith.addf %3, %6 : vector<2x256xf32>
    %c0_6 = arith.constant 0 : index
    %c0_7 = arith.constant 0 : index
    %8 = vector.load %arg6[%c0_6, %c0_7] : memref<2x256xf32, #tpu.memory_space<vmem>>, vector<2x256xf32>
    tpu.vector_store %arg6[%c0_6, %c0_7], %7 {strides = array<i32>} : memref<2x256xf32, #tpu.memory_space<vmem>>, vector<2x256xf32>,
    %c0_i32_8 = arith.constant 0 : i32
    %9 = arith.cmpi eq, %arg1, %c0_i32_8 : i32
    %10 = arith.extui %9 : i1 to i32
    %c0_i32_9 = arith.constant 0 : i32
    %11 = arith.cmpi ne, %10, %c0_i32_9 : i32
    scf.if %11 {
      %c0_10 = arith.constant 0 : index
      %c0_11 = arith.constant 0 : index
      %12 = vector.load %arg6[%c0_10, %c0_11] : memref<2x256xf32, #tpu.memory_space<vmem>>, vector<2x256xf32>
      %c0_12 = arith.constant 0 : index
      %c0_13 = arith.constant 0 : index
      %13 = vector.load %arg4[%c0_12, %c0_13] : memref<1x256xf32, #tpu.memory_space<vmem>>, vector<1x256xf32>
      %14 = vector.broadcast %13 : vector<1x256xf32> to vector<2x256xf32>
      %15 = arith.addf %12, %14 : vector<2x256xf32>
      %cst_14 = arith.constant 0.000000e+00 : f32
      %16 = vector.broadcast %cst_14 : f32 to vector<2x256xf32>
      %17 = arith.maximumf %15, %16 : vector<2x256xf32>
      %18 = arith.truncf %17 : vector<2x256xf32> to vector<2x256xbf16>
      %c0_15 = arith.constant 0 : index
      %c0_16 = arith.constant 0 : index
      %19 = vector.load %arg5[%c0_15, %c0_16] : memref<2x256xbf16, #tpu.memory_space<vmem>>, vector<2x256xbf16>
      tpu.vector_store %arg5[%c0_15, %c0_16], %18 {strides = array<i32>} : memref<2x256xbf16, #tpu.memory_space<vmem>>, vector<2x256xbf16>,
    } else {
    }
    return
  }
  func.func @transform_0(%arg0: i32, %arg1: i32) -> (i32, i32) {
    %c0_i32 = arith.constant 0 : i32
    %c0_i32_0 = arith.constant 0 : i32
    return %c0_i32, %arg1 : i32, i32
  }
  func.func @transform_1(%arg0: i32, %arg1: i32) -> (i32, i32) {
    %c0_i32 = arith.constant 0 : i32
    return %arg1, %arg0 : i32, i32
  }
  func.func @transform_2(%arg0: i32, %arg1: i32) -> (i32, i32) {
    %c0_i32 = arith.constant 0 : i32
    %c0_i32_0 = arith.constant 0 : i32
    return %c0_i32, %arg0 : i32, i32
  }
  func.func @transform_3(%arg0: i32, %arg1: i32) -> (i32, i32) {
    %c0_i32 = arith.constant 0 : i32
    %c0_i32_0 = arith.constant 0 : i32
    return %c0_i32, %arg0 : i32, i32
  }
}

module attributes {stable_mosaic.version = 11 : i64} {
  func.func @_convt_kernel(%arg0: i32, %arg1: i32, %arg2: memref<1x16x32xbf16, #tpu.memory_space<vmem>>, %arg3: memref<1x32x128xbf16, #tpu.memory_space<vmem>>, %arg4: memref<1x16xf32, #tpu.memory_space<vmem>>, %arg5: memref<1x4x1x4x32xbf16, #tpu.memory_space<vmem>>, %arg6: memref<5x6x128xf32, #tpu.memory_space<vmem>>) attributes {dimension_semantics = [#tpu.dimension_semantics<parallel>, #tpu.dimension_semantics<parallel>], iteration_bounds = array<i64: 2, 2>, scalar_prefetch = 0 : i64, scratch_operands = 1 : i64, tpu.core_type = #tpu.core_type<tc>, window_params = [{transform_indices = @transform_0, window_bounds = array<i64: 1, 16, 32>}, {transform_indices = @transform_1, window_bounds = array<i64: 1, 32, 128>}, {pipeline_mode = #tpu.pipeline_mode<synchronous>, transform_indices = @transform_2, window_bounds = array<i64: 1, 16>}, {transform_indices = @transform_3, window_bounds = array<i64: 1, 4, 1, 4, 32>}]} {
    %c0 = arith.constant 0 : index
    %c0_0 = arith.constant 0 : index
    %c0_1 = arith.constant 0 : index
    %0 = vector.load %arg2[%c0, %c0_0, %c0_1] : memref<1x16x32xbf16, #tpu.memory_space<vmem>>, vector<1x16x32xbf16>
    %1 = vector.shape_cast %0 : vector<1x16x32xbf16> to vector<16x32xbf16>
    %c0_2 = arith.constant 0 : index
    %c0_3 = arith.constant 0 : index
    %c0_4 = arith.constant 0 : index
    %2 = vector.load %arg3[%c0_2, %c0_3, %c0_4] : memref<1x32x128xbf16, #tpu.memory_space<vmem>>, vector<1x32x128xbf16>
    %3 = vector.shape_cast %2 : vector<1x32x128xbf16> to vector<32x128xbf16>
    %cst = arith.constant dense<0.000000e+00> : vector<16x128xf32>
    %4 = tpu.matmul %1, %3, %cst {dimension_numbers = #tpu.dot_dimension_numbers<[1], [0], [0], [1], [0, 0, 1, 1], [], []>} : vector<16x32xbf16>, vector<32x128xbf16>, vector<16x128xf32> -> vector<16x128xf32>
    %cst_5 = arith.constant 0.000000e+00 : f32
    %5 = vector.broadcast %cst_5 : f32 to vector<1x6x128xf32>
    %c0_6 = arith.constant 0 : index
    %c0_7 = arith.constant 0 : index
    %c0_8 = arith.constant 0 : index
    %6 = vector.load %arg6[%c0_6, %c0_7, %c0_8] : memref<5x6x128xf32, #tpu.memory_space<vmem>>, vector<1x6x128xf32>
    tpu.vector_store %arg6[%c0_6, %c0_7, %c0_8], %5 {strides = array<i32>} : memref<5x6x128xf32, #tpu.memory_space<vmem>>, vector<1x6x128xf32>,
    %cst_9 = arith.constant 0.000000e+00 : f32
    %7 = vector.broadcast %cst_9 : f32 to vector<1x6x128xf32>
    %c4 = arith.constant 4 : index
    %c0_10 = arith.constant 0 : index
    %c0_11 = arith.constant 0 : index
    %8 = vector.load %arg6[%c4, %c0_10, %c0_11] : memref<5x6x128xf32, #tpu.memory_space<vmem>>, vector<1x6x128xf32>
    tpu.vector_store %arg6[%c4, %c0_10, %c0_11], %7 {strides = array<i32>} : memref<5x6x128xf32, #tpu.memory_space<vmem>>, vector<1x6x128xf32>,
    %cst_12 = arith.constant 0.000000e+00 : f32
    %9 = vector.broadcast %cst_12 : f32 to vector<5x1x128xf32>
    %c0_13 = arith.constant 0 : index
    %c0_14 = arith.constant 0 : index
    %c0_15 = arith.constant 0 : index
    %10 = vector.load %arg6[%c0_13, %c0_14, %c0_15] : memref<5x6x128xf32, #tpu.memory_space<vmem>>, vector<5x1x128xf32>
    tpu.vector_store %arg6[%c0_13, %c0_14, %c0_15], %9 {strides = array<i32>} : memref<5x6x128xf32, #tpu.memory_space<vmem>>, vector<5x1x128xf32>,
    %cst_16 = arith.constant 0.000000e+00 : f32
    %11 = vector.broadcast %cst_16 : f32 to vector<5x1x128xf32>
    %c0_17 = arith.constant 0 : index
    %c5 = arith.constant 5 : index
    %c0_18 = arith.constant 0 : index
    %12 = vector.load %arg6[%c0_17, %c5, %c0_18] : memref<5x6x128xf32, #tpu.memory_space<vmem>>, vector<5x1x128xf32>
    tpu.vector_store %arg6[%c0_17, %c5, %c0_18], %11 {strides = array<i32>} : memref<5x6x128xf32, #tpu.memory_space<vmem>>, vector<5x1x128xf32>,
    %13 = vector.extract_strided_slice %4 {offsets = [0, 0], sizes = [4, 128], strides = [1, 1]} : vector<16x128xf32> to vector<4x128xf32>
    %c1_i32 = arith.constant 1 : i32
    %14 = arith.subi %c1_i32, %arg1 : i32
    %15 = arith.index_cast %14 : i32 to index
    %c1 = arith.constant 1 : index
    %c0_19 = arith.constant 0 : index
    %16 = vector.load %arg6[%15, %c1, %c0_19] : memref<5x6x128xf32, #tpu.memory_space<vmem>>, vector<1x4x128xf32>
    %17 = vector.shape_cast %16 : vector<1x4x128xf32> to vector<4x128xf32>
    %18 = vector.shape_cast %13 : vector<4x128xf32> to vector<1x4x128xf32>
    tpu.vector_store %arg6[%15, %c1, %c0_19], %18 {strides = array<i32>} : memref<5x6x128xf32, #tpu.memory_space<vmem>>, vector<1x4x128xf32>,
    %19 = vector.extract_strided_slice %4 {offsets = [4, 0], sizes = [4, 128], strides = [1, 1]} : vector<16x128xf32> to vector<4x128xf32>
    %c2_i32 = arith.constant 2 : i32
    %20 = arith.subi %c2_i32, %arg1 : i32
    %21 = arith.index_cast %20 : i32 to index
    %c1_20 = arith.constant 1 : index
    %c0_21 = arith.constant 0 : index
    %22 = vector.load %arg6[%21, %c1_20, %c0_21] : memref<5x6x128xf32, #tpu.memory_space<vmem>>, vector<1x4x128xf32>
    %23 = vector.shape_cast %22 : vector<1x4x128xf32> to vector<4x128xf32>
    %24 = vector.shape_cast %19 : vector<4x128xf32> to vector<1x4x128xf32>
    tpu.vector_store %arg6[%21, %c1_20, %c0_21], %24 {strides = array<i32>} : memref<5x6x128xf32, #tpu.memory_space<vmem>>, vector<1x4x128xf32>,
    %25 = vector.extract_strided_slice %4 {offsets = [8, 0], sizes = [4, 128], strides = [1, 1]} : vector<16x128xf32> to vector<4x128xf32>
    %c3_i32 = arith.constant 3 : i32
    %26 = arith.subi %c3_i32, %arg1 : i32
    %27 = arith.index_cast %26 : i32 to index
    %c1_22 = arith.constant 1 : index
    %c0_23 = arith.constant 0 : index
    %28 = vector.load %arg6[%27, %c1_22, %c0_23] : memref<5x6x128xf32, #tpu.memory_space<vmem>>, vector<1x4x128xf32>
    %29 = vector.shape_cast %28 : vector<1x4x128xf32> to vector<4x128xf32>
    %30 = vector.shape_cast %25 : vector<4x128xf32> to vector<1x4x128xf32>
    tpu.vector_store %arg6[%27, %c1_22, %c0_23], %30 {strides = array<i32>} : memref<5x6x128xf32, #tpu.memory_space<vmem>>, vector<1x4x128xf32>,
    %31 = vector.extract_strided_slice %4 {offsets = [12, 0], sizes = [4, 128], strides = [1, 1]} : vector<16x128xf32> to vector<4x128xf32>
    %c4_i32 = arith.constant 4 : i32
    %32 = arith.subi %c4_i32, %arg1 : i32
    %33 = arith.index_cast %32 : i32 to index
    %c1_24 = arith.constant 1 : index
    %c0_25 = arith.constant 0 : index
    %34 = vector.load %arg6[%33, %c1_24, %c0_25] : memref<5x6x128xf32, #tpu.memory_space<vmem>>, vector<1x4x128xf32>
    %35 = vector.shape_cast %34 : vector<1x4x128xf32> to vector<4x128xf32>
    %36 = vector.shape_cast %31 : vector<4x128xf32> to vector<1x4x128xf32>
    tpu.vector_store %arg6[%33, %c1_24, %c0_25], %36 {strides = array<i32>} : memref<5x6x128xf32, #tpu.memory_space<vmem>>, vector<1x4x128xf32>,
    %c0_26 = arith.constant 0 : index
    %c0_27 = arith.constant 0 : index
    %37 = vector.load %arg4[%c0_26, %c0_27] : memref<1x16xf32, #tpu.memory_space<vmem>>, vector<1x16xf32>
    %c0_28 = arith.constant 0 : index
    %c0_29 = arith.constant 0 : index
    %c0_30 = arith.constant 0 : index
    %38 = vector.load %arg6[%c0_28, %c0_29, %c0_30] : memref<5x6x128xf32, #tpu.memory_space<vmem>>, vector<4x4x16xf32>
    %c0_31 = arith.constant 0 : index
    %c1_32 = arith.constant 1 : index
    %c16 = arith.constant 16 : index
    %39 = vector.load %arg6[%c0_31, %c1_32, %c16] : memref<5x6x128xf32, #tpu.memory_space<vmem>>, vector<4x4x16xf32>
    %40 = arith.addf %38, %39 : vector<4x4x16xf32>
    %c1_33 = arith.constant 1 : index
    %c0_34 = arith.constant 0 : index
    %c32 = arith.constant 32 : index
    %41 = vector.load %arg6[%c1_33, %c0_34, %c32] : memref<5x6x128xf32, #tpu.memory_space<vmem>>, vector<4x4x16xf32>
    %42 = arith.addf %40, %41 : vector<4x4x16xf32>
    %c1_35 = arith.constant 1 : index
    %c1_36 = arith.constant 1 : index
    %c48 = arith.constant 48 : index
    %43 = vector.load %arg6[%c1_35, %c1_36, %c48] : memref<5x6x128xf32, #tpu.memory_space<vmem>>, vector<4x4x16xf32>
    %44 = arith.addf %42, %43 : vector<4x4x16xf32>
    %45 = vector.shape_cast %37 : vector<1x16xf32> to vector<1x1x16xf32>
    %46 = vector.broadcast %45 : vector<1x1x16xf32> to vector<4x4x16xf32>
    %47 = arith.addf %44, %46 : vector<4x4x16xf32>
    %cst_37 = arith.constant 0.000000e+00 : f32
    %48 = vector.broadcast %cst_37 : f32 to vector<4x4x16xf32>
    %49 = arith.cmpf ogt, %47, %48 : vector<4x4x16xf32>
    %cst_38 = arith.constant 0.00999999977 : f32
    %50 = vector.broadcast %cst_38 : f32 to vector<4x4x16xf32>
    %51 = arith.mulf %50, %47 : vector<4x4x16xf32>
    %52 = arith.select %49, %47, %51 : vector<4x4x16xi1>, vector<4x4x16xf32>
    %c0_39 = arith.constant 0 : index
    %c1_40 = arith.constant 1 : index
    %c64 = arith.constant 64 : index
    %53 = vector.load %arg6[%c0_39, %c1_40, %c64] : memref<5x6x128xf32, #tpu.memory_space<vmem>>, vector<4x4x16xf32>
    %c0_41 = arith.constant 0 : index
    %c2 = arith.constant 2 : index
    %c80 = arith.constant 80 : index
    %54 = vector.load %arg6[%c0_41, %c2, %c80] : memref<5x6x128xf32, #tpu.memory_space<vmem>>, vector<4x4x16xf32>
    %55 = arith.addf %53, %54 : vector<4x4x16xf32>
    %c1_42 = arith.constant 1 : index
    %c1_43 = arith.constant 1 : index
    %c96 = arith.constant 96 : index
    %56 = vector.load %arg6[%c1_42, %c1_43, %c96] : memref<5x6x128xf32, #tpu.memory_space<vmem>>, vector<4x4x16xf32>
    %57 = arith.addf %55, %56 : vector<4x4x16xf32>
    %c1_44 = arith.constant 1 : index
    %c2_45 = arith.constant 2 : index
    %c112 = arith.constant 112 : index
    %58 = vector.load %arg6[%c1_44, %c2_45, %c112] : memref<5x6x128xf32, #tpu.memory_space<vmem>>, vector<4x4x16xf32>
    %59 = arith.addf %57, %58 : vector<4x4x16xf32>
    %60 = vector.shape_cast %37 : vector<1x16xf32> to vector<1x1x16xf32>
    %61 = vector.broadcast %60 : vector<1x1x16xf32> to vector<4x4x16xf32>
    %62 = arith.addf %59, %61 : vector<4x4x16xf32>
    %cst_46 = arith.constant 0.000000e+00 : f32
    %63 = vector.broadcast %cst_46 : f32 to vector<4x4x16xf32>
    %64 = arith.cmpf ogt, %62, %63 : vector<4x4x16xf32>
    %cst_47 = arith.constant 0.00999999977 : f32
    %65 = vector.broadcast %cst_47 : f32 to vector<4x4x16xf32>
    %66 = arith.mulf %65, %62 : vector<4x4x16xf32>
    %67 = arith.select %64, %62, %66 : vector<4x4x16xi1>, vector<4x4x16xf32>
    %68 = tpu.concatenate %52, %67 in 2 : vector<4x4x16xf32>, vector<4x4x16xf32> -> vector<4x4x32xf32>
    %69 = arith.truncf %68 : vector<4x4x32xf32> to vector<4x4x32xbf16>
    %c0_48 = arith.constant 0 : index
    %c0_49 = arith.constant 0 : index
    %c0_50 = arith.constant 0 : index
    %c0_51 = arith.constant 0 : index
    %c0_52 = arith.constant 0 : index
    %70 = vector.load %arg5[%c0_48, %c0_49, %c0_50, %c0_51, %c0_52] : memref<1x4x1x4x32xbf16, #tpu.memory_space<vmem>>, vector<1x4x1x4x32xbf16>
    %71 = vector.shape_cast %70 : vector<1x4x1x4x32xbf16> to vector<4x4x32xbf16>
    %72 = vector.shape_cast %69 : vector<4x4x32xbf16> to vector<1x4x1x4x32xbf16>
    tpu.vector_store %arg5[%c0_48, %c0_49, %c0_50, %c0_51, %c0_52], %72 {strides = array<i32>} : memref<1x4x1x4x32xbf16, #tpu.memory_space<vmem>>, vector<1x4x1x4x32xbf16>,
    return
  }
  func.func @transform_0(%arg0: i32, %arg1: i32) -> (i32, i32, i32) {
    %c0_i32 = arith.constant 0 : i32
    %c0_i32_0 = arith.constant 0 : i32
    %c0_i32_1 = arith.constant 0 : i32
    return %arg0, %c0_i32, %c0_i32_0 : i32, i32, i32
  }
  func.func @transform_1(%arg0: i32, %arg1: i32) -> (i32, i32, i32) {
    %c0_i32 = arith.constant 0 : i32
    %c0_i32_0 = arith.constant 0 : i32
    %c0_i32_1 = arith.constant 0 : i32
    return %arg1, %c0_i32, %c0_i32_0 : i32, i32, i32
  }
  func.func @transform_2(%arg0: i32, %arg1: i32) -> (i32, i32) {
    %c0_i32 = arith.constant 0 : i32
    %c0_i32_0 = arith.constant 0 : i32
    %c0_i32_1 = arith.constant 0 : i32
    return %c0_i32, %c0_i32_0 : i32, i32
  }
  func.func @transform_3(%arg0: i32, %arg1: i32) -> (i32, i32, i32, i32, i32) {
    %c0_i32 = arith.constant 0 : i32
    %c0_i32_0 = arith.constant 0 : i32
    %c0_i32_1 = arith.constant 0 : i32
    %c0_i32_2 = arith.constant 0 : i32
    return %arg0, %c0_i32, %arg1, %c0_i32_0, %c0_i32_1 : i32, i32, i32, i32, i32
  }
}

module attributes {stable_mosaic.version = 11 : i64} {
  func.func @_convt_final_kernel(%arg0: i32, %arg1: i32, %arg2: memref<1x64x16xbf16, #tpu.memory_space<vmem>>, %arg3: memref<1x16x64xbf16, #tpu.memory_space<vmem>>, %arg4: memref<1x8xf32, #tpu.memory_space<vmem>>, %arg5: memref<8x3xf32, #tpu.memory_space<vmem>>, %arg6: memref<1x3xf32, #tpu.memory_space<vmem>>, %arg7: memref<1x1x64x6xf32, #tpu.memory_space<vmem>>, %arg8: memref<9x10x64xf32, #tpu.memory_space<vmem>>) attributes {dimension_semantics = [#tpu.dimension_semantics<parallel>, #tpu.dimension_semantics<parallel>], iteration_bounds = array<i64: 2, 2>, scalar_prefetch = 0 : i64, scratch_operands = 1 : i64, tpu.core_type = #tpu.core_type<tc>, window_params = [{transform_indices = @transform_0, window_bounds = array<i64: 1, 64, 16>}, {transform_indices = @transform_1, window_bounds = array<i64: 1, 16, 64>}, {pipeline_mode = #tpu.pipeline_mode<synchronous>, transform_indices = @transform_2, window_bounds = array<i64: 1, 8>}, {pipeline_mode = #tpu.pipeline_mode<synchronous>, transform_indices = @transform_3, window_bounds = array<i64: 8, 3>}, {pipeline_mode = #tpu.pipeline_mode<synchronous>, transform_indices = @transform_4, window_bounds = array<i64: 1, 3>}, {transform_indices = @transform_5, window_bounds = array<i64: 1, 1, 64, 6>}]} {
    %c0 = arith.constant 0 : index
    %c0_0 = arith.constant 0 : index
    %c0_1 = arith.constant 0 : index
    %0 = vector.load %arg2[%c0, %c0_0, %c0_1] : memref<1x64x16xbf16, #tpu.memory_space<vmem>>, vector<1x64x16xbf16>
    %1 = vector.shape_cast %0 : vector<1x64x16xbf16> to vector<64x16xbf16>
    %c0_2 = arith.constant 0 : index
    %c0_3 = arith.constant 0 : index
    %c0_4 = arith.constant 0 : index
    %2 = vector.load %arg3[%c0_2, %c0_3, %c0_4] : memref<1x16x64xbf16, #tpu.memory_space<vmem>>, vector<1x16x64xbf16>
    %3 = vector.shape_cast %2 : vector<1x16x64xbf16> to vector<16x64xbf16>
    %cst = arith.constant dense<0.000000e+00> : vector<64x64xf32>
    %4 = tpu.matmul %1, %3, %cst {dimension_numbers = #tpu.dot_dimension_numbers<[1], [0], [0], [1], [0, 0, 1, 1], [], []>} : vector<64x16xbf16>, vector<16x64xbf16>, vector<64x64xf32> -> vector<64x64xf32>
    %cst_5 = arith.constant 0.000000e+00 : f32
    %5 = vector.broadcast %cst_5 : f32 to vector<1x10x64xf32>
    %c0_6 = arith.constant 0 : index
    %c0_7 = arith.constant 0 : index
    %c0_8 = arith.constant 0 : index
    %6 = vector.load %arg8[%c0_6, %c0_7, %c0_8] : memref<9x10x64xf32, #tpu.memory_space<vmem>>, vector<1x10x64xf32>
    tpu.vector_store %arg8[%c0_6, %c0_7, %c0_8], %5 {strides = array<i32>} : memref<9x10x64xf32, #tpu.memory_space<vmem>>, vector<1x10x64xf32>,
    %cst_9 = arith.constant 0.000000e+00 : f32
    %7 = vector.broadcast %cst_9 : f32 to vector<1x10x64xf32>
    %c8 = arith.constant 8 : index
    %c0_10 = arith.constant 0 : index
    %c0_11 = arith.constant 0 : index
    %8 = vector.load %arg8[%c8, %c0_10, %c0_11] : memref<9x10x64xf32, #tpu.memory_space<vmem>>, vector<1x10x64xf32>
    tpu.vector_store %arg8[%c8, %c0_10, %c0_11], %7 {strides = array<i32>} : memref<9x10x64xf32, #tpu.memory_space<vmem>>, vector<1x10x64xf32>,
    %cst_12 = arith.constant 0.000000e+00 : f32
    %9 = vector.broadcast %cst_12 : f32 to vector<9x1x64xf32>
    %c0_13 = arith.constant 0 : index
    %c0_14 = arith.constant 0 : index
    %c0_15 = arith.constant 0 : index
    %10 = vector.load %arg8[%c0_13, %c0_14, %c0_15] : memref<9x10x64xf32, #tpu.memory_space<vmem>>, vector<9x1x64xf32>
    tpu.vector_store %arg8[%c0_13, %c0_14, %c0_15], %9 {strides = array<i32>} : memref<9x10x64xf32, #tpu.memory_space<vmem>>, vector<9x1x64xf32>,
    %cst_16 = arith.constant 0.000000e+00 : f32
    %11 = vector.broadcast %cst_16 : f32 to vector<9x1x64xf32>
    %c0_17 = arith.constant 0 : index
    %c9 = arith.constant 9 : index
    %c0_18 = arith.constant 0 : index
    %12 = vector.load %arg8[%c0_17, %c9, %c0_18] : memref<9x10x64xf32, #tpu.memory_space<vmem>>, vector<9x1x64xf32>
    tpu.vector_store %arg8[%c0_17, %c9, %c0_18], %11 {strides = array<i32>} : memref<9x10x64xf32, #tpu.memory_space<vmem>>, vector<9x1x64xf32>,
    %13 = vector.shape_cast %4 : vector<64x64xf32> to vector<8x8x64xf32>
    %c1_i32 = arith.constant 1 : i32
    %14 = arith.subi %c1_i32, %arg1 : i32
    %15 = arith.index_cast %14 : i32 to index
    %c1 = arith.constant 1 : index
    %c0_19 = arith.constant 0 : index
    %16 = vector.load %arg8[%15, %c1, %c0_19] : memref<9x10x64xf32, #tpu.memory_space<vmem>>, vector<8x8x64xf32>
    tpu.vector_store %arg8[%15, %c1, %c0_19], %13 {strides = array<i32>} : memref<9x10x64xf32, #tpu.memory_space<vmem>>, vector<8x8x64xf32>,
    %c0_20 = arith.constant 0 : index
    %c0_21 = arith.constant 0 : index
    %17 = vector.load %arg4[%c0_20, %c0_21] : memref<1x8xf32, #tpu.memory_space<vmem>>, vector<1x8xf32>
    %c0_22 = arith.constant 0 : index
    %c0_23 = arith.constant 0 : index
    %18 = vector.load %arg5[%c0_22, %c0_23] : memref<8x3xf32, #tpu.memory_space<vmem>>, vector<8x3xf32>
    %c0_24 = arith.constant 0 : index
    %c0_25 = arith.constant 0 : index
    %19 = vector.load %arg6[%c0_24, %c0_25] : memref<1x3xf32, #tpu.memory_space<vmem>>, vector<1x3xf32>
    %c0_26 = arith.constant 0 : index
    %c0_27 = arith.constant 0 : index
    %c0_28 = arith.constant 0 : index
    %20 = vector.load %arg8[%c0_26, %c0_27, %c0_28] : memref<9x10x64xf32, #tpu.memory_space<vmem>>, vector<8x8x8xf32>
    %c0_29 = arith.constant 0 : index
    %c1_30 = arith.constant 1 : index
    %c8_31 = arith.constant 8 : index
    %21 = vector.load %arg8[%c0_29, %c1_30, %c8_31] : memref<9x10x64xf32, #tpu.memory_space<vmem>>, vector<8x8x8xf32>
    %22 = arith.addf %20, %21 : vector<8x8x8xf32>
    %c1_32 = arith.constant 1 : index
    %c0_33 = arith.constant 0 : index
    %c16 = arith.constant 16 : index
    %23 = vector.load %arg8[%c1_32, %c0_33, %c16] : memref<9x10x64xf32, #tpu.memory_space<vmem>>, vector<8x8x8xf32>
    %24 = arith.addf %22, %23 : vector<8x8x8xf32>
    %c1_34 = arith.constant 1 : index
    %c1_35 = arith.constant 1 : index
    %c24 = arith.constant 24 : index
    %25 = vector.load %arg8[%c1_34, %c1_35, %c24] : memref<9x10x64xf32, #tpu.memory_space<vmem>>, vector<8x8x8xf32>
    %26 = arith.addf %24, %25 : vector<8x8x8xf32>
    %27 = vector.shape_cast %17 : vector<1x8xf32> to vector<1x1x8xf32>
    %28 = vector.broadcast %27 : vector<1x1x8xf32> to vector<8x8x8xf32>
    %29 = arith.addf %26, %28 : vector<8x8x8xf32>
    %cst_36 = arith.constant 0.000000e+00 : f32
    %30 = vector.broadcast %cst_36 : f32 to vector<8x8x8xf32>
    %31 = arith.cmpf ogt, %29, %30 : vector<8x8x8xf32>
    %cst_37 = arith.constant 0.00999999977 : f32
    %32 = vector.broadcast %cst_37 : f32 to vector<8x8x8xf32>
    %33 = arith.mulf %32, %29 : vector<8x8x8xf32>
    %34 = arith.select %31, %29, %33 : vector<8x8x8xi1>, vector<8x8x8xf32>
    %35 = vector.shape_cast %34 : vector<8x8x8xf32> to vector<64x8xf32>
    %36 = vector.extract_strided_slice %18 {offsets = [0, 0], sizes = [8, 1], strides = [1, 1]} : vector<8x3xf32> to vector<8x1xf32>
    %37 = vector.shape_cast %36 : vector<8x1xf32> to vector<8xf32>
    %38 = vector.shape_cast %37 : vector<8xf32> to vector<1x8xf32>
    %39 = vector.broadcast %38 : vector<1x8xf32> to vector<64x8xf32>
    %40 = arith.mulf %35, %39 : vector<64x8xf32>
    %cst_38 = arith.constant dense<0.000000e+00> : vector<64xf32>
    %41 = vector.multi_reduction <add>, %40, %cst_38 [1] : vector<64x8xf32> to vector<64xf32>
    %42 = vector.shape_cast %41 : vector<64xf32> to vector<64x1xf32>
    %43 = vector.extract_strided_slice %18 {offsets = [0, 1], sizes = [8, 1], strides = [1, 1]} : vector<8x3xf32> to vector<8x1xf32>
    %44 = vector.shape_cast %43 : vector<8x1xf32> to vector<8xf32>
    %45 = vector.shape_cast %44 : vector<8xf32> to vector<1x8xf32>
    %46 = vector.broadcast %45 : vector<1x8xf32> to vector<64x8xf32>
    %47 = arith.mulf %35, %46 : vector<64x8xf32>
    %cst_39 = arith.constant dense<0.000000e+00> : vector<64xf32>
    %48 = vector.multi_reduction <add>, %47, %cst_39 [1] : vector<64x8xf32> to vector<64xf32>
    %49 = vector.shape_cast %48 : vector<64xf32> to vector<64x1xf32>
    %50 = vector.extract_strided_slice %18 {offsets = [0, 2], sizes = [8, 1], strides = [1, 1]} : vector<8x3xf32> to vector<8x1xf32>
    %51 = vector.shape_cast %50 : vector<8x1xf32> to vector<8xf32>
    %52 = vector.shape_cast %51 : vector<8xf32> to vector<1x8xf32>
    %53 = vector.broadcast %52 : vector<1x8xf32> to vector<64x8xf32>
    %54 = arith.mulf %35, %53 : vector<64x8xf32>
    %cst_40 = arith.constant dense<0.000000e+00> : vector<64xf32>
    %55 = vector.multi_reduction <add>, %54, %cst_40 [1] : vector<64x8xf32> to vector<64xf32>
    %56 = vector.shape_cast %55 : vector<64xf32> to vector<64x1xf32>
    %57 = tpu.concatenate %42, %49, %56 in 1 : vector<64x1xf32>, vector<64x1xf32>, vector<64x1xf32> -> vector<64x3xf32>
    %58 = vector.broadcast %19 : vector<1x3xf32> to vector<64x3xf32>
    %59 = arith.addf %57, %58 : vector<64x3xf32>
    %60 = math.tanh %59 : vector<64x3xf32>
    %c0_41 = arith.constant 0 : index
    %c1_42 = arith.constant 1 : index
    %c32 = arith.constant 32 : index
    %61 = vector.load %arg8[%c0_41, %c1_42, %c32] : memref<9x10x64xf32, #tpu.memory_space<vmem>>, vector<8x8x8xf32>
    %c0_43 = arith.constant 0 : index
    %c2 = arith.constant 2 : index
    %c40 = arith.constant 40 : index
    %62 = vector.load %arg8[%c0_43, %c2, %c40] : memref<9x10x64xf32, #tpu.memory_space<vmem>>, vector<8x8x8xf32>
    %63 = arith.addf %61, %62 : vector<8x8x8xf32>
    %c1_44 = arith.constant 1 : index
    %c1_45 = arith.constant 1 : index
    %c48 = arith.constant 48 : index
    %64 = vector.load %arg8[%c1_44, %c1_45, %c48] : memref<9x10x64xf32, #tpu.memory_space<vmem>>, vector<8x8x8xf32>
    %65 = arith.addf %63, %64 : vector<8x8x8xf32>
    %c1_46 = arith.constant 1 : index
    %c2_47 = arith.constant 2 : index
    %c56 = arith.constant 56 : index
    %66 = vector.load %arg8[%c1_46, %c2_47, %c56] : memref<9x10x64xf32, #tpu.memory_space<vmem>>, vector<8x8x8xf32>
    %67 = arith.addf %65, %66 : vector<8x8x8xf32>
    %68 = vector.shape_cast %17 : vector<1x8xf32> to vector<1x1x8xf32>
    %69 = vector.broadcast %68 : vector<1x1x8xf32> to vector<8x8x8xf32>
    %70 = arith.addf %67, %69 : vector<8x8x8xf32>
    %cst_48 = arith.constant 0.000000e+00 : f32
    %71 = vector.broadcast %cst_48 : f32 to vector<8x8x8xf32>
    %72 = arith.cmpf ogt, %70, %71 : vector<8x8x8xf32>
    %cst_49 = arith.constant 0.00999999977 : f32
    %73 = vector.broadcast %cst_49 : f32 to vector<8x8x8xf32>
    %74 = arith.mulf %73, %70 : vector<8x8x8xf32>
    %75 = arith.select %72, %70, %74 : vector<8x8x8xi1>, vector<8x8x8xf32>
    %76 = vector.shape_cast %75 : vector<8x8x8xf32> to vector<64x8xf32>
    %77 = vector.extract_strided_slice %18 {offsets = [0, 0], sizes = [8, 1], strides = [1, 1]} : vector<8x3xf32> to vector<8x1xf32>
    %78 = vector.shape_cast %77 : vector<8x1xf32> to vector<8xf32>
    %79 = vector.shape_cast %78 : vector<8xf32> to vector<1x8xf32>
    %80 = vector.broadcast %79 : vector<1x8xf32> to vector<64x8xf32>
    %81 = arith.mulf %76, %80 : vector<64x8xf32>
    %cst_50 = arith.constant dense<0.000000e+00> : vector<64xf32>
    %82 = vector.multi_reduction <add>, %81, %cst_50 [1] : vector<64x8xf32> to vector<64xf32>
    %83 = vector.shape_cast %82 : vector<64xf32> to vector<64x1xf32>
    %84 = vector.extract_strided_slice %18 {offsets = [0, 1], sizes = [8, 1], strides = [1, 1]} : vector<8x3xf32> to vector<8x1xf32>
    %85 = vector.shape_cast %84 : vector<8x1xf32> to vector<8xf32>
    %86 = vector.shape_cast %85 : vector<8xf32> to vector<1x8xf32>
    %87 = vector.broadcast %86 : vector<1x8xf32> to vector<64x8xf32>
    %88 = arith.mulf %76, %87 : vector<64x8xf32>
    %cst_51 = arith.constant dense<0.000000e+00> : vector<64xf32>
    %89 = vector.multi_reduction <add>, %88, %cst_51 [1] : vector<64x8xf32> to vector<64xf32>
    %90 = vector.shape_cast %89 : vector<64xf32> to vector<64x1xf32>
    %91 = vector.extract_strided_slice %18 {offsets = [0, 2], sizes = [8, 1], strides = [1, 1]} : vector<8x3xf32> to vector<8x1xf32>
    %92 = vector.shape_cast %91 : vector<8x1xf32> to vector<8xf32>
    %93 = vector.shape_cast %92 : vector<8xf32> to vector<1x8xf32>
    %94 = vector.broadcast %93 : vector<1x8xf32> to vector<64x8xf32>
    %95 = arith.mulf %76, %94 : vector<64x8xf32>
    %cst_52 = arith.constant dense<0.000000e+00> : vector<64xf32>
    %96 = vector.multi_reduction <add>, %95, %cst_52 [1] : vector<64x8xf32> to vector<64xf32>
    %97 = vector.shape_cast %96 : vector<64xf32> to vector<64x1xf32>
    %98 = tpu.concatenate %83, %90, %97 in 1 : vector<64x1xf32>, vector<64x1xf32>, vector<64x1xf32> -> vector<64x3xf32>
    %99 = vector.broadcast %19 : vector<1x3xf32> to vector<64x3xf32>
    %100 = arith.addf %98, %99 : vector<64x3xf32>
    %101 = math.tanh %100 : vector<64x3xf32>
    %102 = tpu.concatenate %60, %101 in 1 : vector<64x3xf32>, vector<64x3xf32> -> vector<64x6xf32>
    %c0_53 = arith.constant 0 : index
    %c0_54 = arith.constant 0 : index
    %c0_55 = arith.constant 0 : index
    %c0_56 = arith.constant 0 : index
    %103 = vector.load %arg7[%c0_53, %c0_54, %c0_55, %c0_56] : memref<1x1x64x6xf32, #tpu.memory_space<vmem>>, vector<1x1x64x6xf32>
    %104 = vector.shape_cast %103 : vector<1x1x64x6xf32> to vector<64x6xf32>
    %105 = vector.shape_cast %102 : vector<64x6xf32> to vector<1x1x64x6xf32>
    tpu.vector_store %arg7[%c0_53, %c0_54, %c0_55, %c0_56], %105 {strides = array<i32>} : memref<1x1x64x6xf32, #tpu.memory_space<vmem>>, vector<1x1x64x6xf32>,
    return
  }
  func.func @transform_0(%arg0: i32, %arg1: i32) -> (i32, i32, i32) {
    %c0_i32 = arith.constant 0 : i32
    %c0_i32_0 = arith.constant 0 : i32
    %c0_i32_1 = arith.constant 0 : i32
    return %arg0, %c0_i32, %c0_i32_0 : i32, i32, i32
  }
  func.func @transform_1(%arg0: i32, %arg1: i32) -> (i32, i32, i32) {
    %c0_i32 = arith.constant 0 : i32
    %c0_i32_0 = arith.constant 0 : i32
    %c0_i32_1 = arith.constant 0 : i32
    return %arg1, %c0_i32, %c0_i32_0 : i32, i32, i32
  }
  func.func @transform_2(%arg0: i32, %arg1: i32) -> (i32, i32) {
    %c0_i32 = arith.constant 0 : i32
    %c0_i32_0 = arith.constant 0 : i32
    %c0_i32_1 = arith.constant 0 : i32
    return %c0_i32, %c0_i32_0 : i32, i32
  }
  func.func @transform_3(%arg0: i32, %arg1: i32) -> (i32, i32) {
    %c0_i32 = arith.constant 0 : i32
    %c0_i32_0 = arith.constant 0 : i32
    %c0_i32_1 = arith.constant 0 : i32
    return %c0_i32, %c0_i32_0 : i32, i32
  }
  func.func @transform_4(%arg0: i32, %arg1: i32) -> (i32, i32) {
    %c0_i32 = arith.constant 0 : i32
    %c0_i32_0 = arith.constant 0 : i32
    %c0_i32_1 = arith.constant 0 : i32
    return %c0_i32, %c0_i32_0 : i32, i32
  }
  func.func @transform_5(%arg0: i32, %arg1: i32) -> (i32, i32, i32, i32) {
    %c0_i32 = arith.constant 0 : i32
    %c0_i32_0 = arith.constant 0 : i32
    %c0_i32_1 = arith.constant 0 : i32
    return %arg0, %arg1, %c0_i32, %c0_i32_0 : i32, i32, i32, i32
  }
}

</mosaic_0001>

<bundles_post_ra>
// kernel: _lambda_.4
= control target key start
LH: loop header
LB: loop body
LE: loop exit
PB: predicated region body
PF: predicated region fallthrough
CT: control target
= control target key end

     0   :  { %8 = vsyncpa [#allocation4], 0  ;;  %s222_s12 = smov [#allocation3]   ;;  %s261_s0 = inlined_call_operand.vmem [shape: bf16[2,32], index: 0, kind: input, shape index: {}]   ;;  %s262_s1 = inlined_call_operand.hbm [shape: bf16[32,256], index: 1, kind: input, shape index: {}]   ;;  %s263_s2 = inlined_call_operand.vmem [shape: f32[1,256], index: 2, kind: input, shape index: {}]   ;;  %s264_s3 = inlined_call_operand.vmem [shape: bf16[2,256], index: 3, kind: output, shape index: {}]  }
   0x1   :  { %s16_s13 = sshll.u32 %s222_s12, 4  ;;  %s17_s13 = int_to_ptr.vmem [resolvable:$true] %s16_s13 }
   0x2   :  { %s208_s14 = scalar_lea.vmem %s17_s13, 512  ;;  %p213_p1 = scmp.lt.s32.totalorder %s17_s13, %s17_s13 }
   0x3   :  { %p209_p0 = scmp.ne.s32.totalorder %s17_s13, %s208_s14  ;;  %p214_p2 = scmp.lt.s32.totalorder %s208_s14, %s208_s14 }
   0x5   :  { %p215_p3 = por %p214_p2, %p213_p1 }
   0x7   :  { %p216_p4 = pnand %p215_p3, %p209_p0 }
   0x9   :  { %219 = shalt.err (!%p216_p4)
}
   0xa   :  { %s223_s15 = smov 128   ;;  %s224_s16 = smov 8  }
   0xb   :  { %22 = dma.hbm_to_vmem [thread:$0]  %s262_s1, 512, %s17_s13, [#allocation4], %s223_s15, %s223_s15, %s224_s16  }
   0xc   :  { %220 = dma.done.wait [#allocation4], 512  }
   0xd   :  { %221 = vsyncadd [#allocation4], 4294966784  ;;  %v225_v0 = vmov 0   ;;  %v194_v1 = vld [vmem:[#allocation3 + $0x14] ss:$8 sps:$4 sm:$0xff]   ;;  %vm60_vm0 = vcmask 261120   ;;  %v111_v9 = vlaneseq }
   0xe   :  { %96 = vmatprep.mubr.bf16.mxu0 %v225_v0  ;;  %v196_v2 = vld [vmem:[#allocation3 + $0x10] ss:$8 sps:$4 sm:$0xff]   ;;  %76 = vmatprep.subr.bf16.mxu0 %v194_v1  ;;  %v197_v3 = vld [vmem:[#allocation3 + $0x4] ss:$8 sps:$4 sm:$0xff]   ;;  %v199_v4 = vld [vmem:[#allocation3] ss:$8 sps:$4 sm:$0xff]  }
   0xf   :  { %77 = vmatpush1.bf16.msra.mxu0 %v196_v2  ;;  %v35_v5 = vld [vmem:[%s261_s0] sm:$0x1]  ;;  %v226_v6 = vmov 0.0   ;;  %v227_v7 = vmov 1983009808   ;;  %v112_v11 = vshrl.u32 %v111_v9, 7 }
  0x10   :  { %78 = vmatprep.subr.bf16.mxu0 %v197_v3  ;;  %33 = vst [vmem:[#allocation2] sm:$0xf] %v226_v6  ;;  %v109_v8 = vunpack.c.l.s4 %v227_v7  ;;  %v122_v17 = vld [vmem:[%s263_s2] sm:$0x3]  ;;  %v228_v28 = vmov 1966171168  }
  0x11   :  { %v126_v14 = vsub.s32 0, %v112_v11  ;;  %v130_v15 = vsub.s32 1, %v112_v11  ;;  %v160_v29 = vunpack.c.l.s4 %v228_v28 }
  0x12   :  { %v110_v10 = vunpack.c.0.s8 %v109_v8 }
  0x13   :  { %79 = vmatpush1.bf16.msra.mxu0 %v199_v4  ;;  %v127_v22 = vrot.slane %v122_v17, %v126_v14  ;;  %v131_v23 = vrot.slane %v122_v17, %v130_v15  ;;  %v161_v33 = vunpack.c.0.s8 %v160_v29 }
  0x14   :  { %v113_v13 = vsub.s32 %v110_v10, %v112_v11 }
  0x15   :  { %v132_v26 = vcombine.low %v127_v22, %v131_v23  ;;  %v164_v36 = vsub.s32 %v161_v33, %v112_v11 }
  0x16   :  { %184 = vmatmul.mubr.msk.bf16.vlgmr.msra.gmra.mxu0 %vm60_vm0, %v35_v5 }
  0x17   :  { %v34_v19 = vld [vmem:[#allocation2] sm:$0xf]  ;;  %v139_v27 = vrot.slane %v132_v26, %v113_v13 }
  0xd6   :  { %v98_v12 = vpop.f32.mrf.mxu0 }
  0xd8   :  { %v100_v16 = vpop.f32.mrf.mxu0 }
  0xd9   :  { %v107_v18 = vcombine.low %v98_v12, %v100_v16 }
  0xda   :  { %v102_v20 = vpop.f32.mrf.mxu0 }
  0xdb   :  { %v114_v21 = vrot.slane %v107_v18, %v113_v13 }
  0xdc   :  { %v103_v24 = vpop.f32.mrf.mxu0 }
  0xdd   :  { %v116_v25 = vadd.f32 %v114_v21, %v34_v19 }
  0xdf   :  { %117 = vst [vmem:[#allocation2] sm:$0xf] %v116_v25 }
  0xe6   :  { %v121_v30 = vld [vmem:[#allocation2] sm:$0xf] }
  0xe7   :  { %v141_v31 = vadd.f32 %v139_v27, %v121_v30 }
  0xe9   :  { %v142_v32 = vmax.f32 %v141_v31, 0.0 }
  0xeb   :  { %v150_v34 = vrot.slane %v142_v32, %v113_v13 }
  0xed   :  { %v151_v35 = vcombine.high %v150_v34, %v150_v34 }
  0xef   :  { %v185_v37 = vpack.c.bf16 %v151_v35, %v150_v34 }
  0xf1   :  { %v165_v38 = vrot.slane %v185_v37, %v164_v36 }
  0xf3   :  { %186 = vst.sshfl [vmem:[%s264_s3] sm:$0x5 pattern:$0x73625140] %v165_v38 }
  0xf4   :  { %179 = vsyncpa [#allocation4], 1 }

// kernel: _lambda_.5
= control target key start
LH: loop header
LB: loop body
LE: loop exit
PB: predicated region body
PF: predicated region fallthrough
CT: control target
= control target key end

     0   :  { %8 = vsyncpa [#allocation4], 0  ;;  %s843_s12 = smov [#allocation3]   ;;  %s894_s0 = inlined_call_operand.vmem [shape: bf16[2,256], index: 0, kind: input, shape index: {}]   ;;  %s895_s1 = inlined_call_operand.hbm [shape: bf16[256,512], index: 1, kind: input, shape index: {}]   ;;  %s896_s2 = inlined_call_operand.vmem [shape: f32[1,512], index: 2, kind: input, shape index: {}]   ;;  %s897_s3 = inlined_call_operand.vmem [shape: bf16[2,512], index: 3, kind: output, shape index: {}]  }
   0x1   :  { %s16_s13 = sshll.u32 %s843_s12, 4  ;;  %s17_s13 = int_to_ptr.vmem [resolvable:$true] %s16_s13 }
   0x2   :  { %s829_s14 = scalar_lea.vmem %s17_s13, 8192  ;;  %p834_p1 = scmp.lt.s32.totalorder %s17_s13, %s17_s13 }
   0x3   :  { %p830_p0 = scmp.ne.s32.totalorder %s17_s13, %s829_s14  ;;  %p835_p2 = scmp.lt.s32.totalorder %s829_s14, %s829_s14 }
   0x5   :  { %p836_p3 = por %p835_p2, %p834_p1 }
   0x7   :  { %p837_p4 = pnand %p836_p3, %p830_p0 }
   0x9   :  { %840 = shalt.err (!%p837_p4)
}
   0xa   :  { %s844_s15 = smov 256   ;;  %s845_s16 = smov 16  }
   0xb   :  { %22 = dma.hbm_to_vmem [thread:$0]  %s895_s1, 8192, %s17_s13, [#allocation4], %s844_s15, %s844_s15, %s845_s16  }
   0xc   :  { %841 = dma.done.wait [#allocation4], 8192  }
   0xd   :  { %842 = vsyncadd [#allocation4], 4294959104  ;;  %v725_v0 = vld [vmem:[#allocation3 + $0xe4] ss:$16 sps:$4 sm:$0xff]   ;;  %v727_v1 = vld [vmem:[#allocation3 + $0xec] ss:$16 sps:$4 sm:$0xff]   ;;  %v111_v40 = vlaneseq }
   0xe   :  { %444 = vmatprep.subr.bf16.mxu0 %v725_v0  ;;  %v729_v2 = vld [vmem:[#allocation3 + $0xe0] ss:$16 sps:$4 sm:$0xff]   ;;  %v730_v3 = vld [vmem:[#allocation3 + $0xe8] ss:$16 sps:$4 sm:$0xff]   ;;  %485 = vmatprep.subr.bf16.mxu1 %v727_v1  ;;  %v731_v4 = vld [vmem:[#allocation3 + $0xc4] ss:$16 sps:$4 sm:$0xff]  }
   0xf   :  { %445 = vmatpush1.bf16.msra.mxu0 %v729_v2  ;;  %486 = vmatpush1.bf16.msra.mxu1 %v730_v3  ;;  %v733_v5 = vld [vmem:[#allocation3 + $0xcc] ss:$16 sps:$4 sm:$0xff]   ;;  %v735_v6 = vld [vmem:[#allocation3 + $0xc0] ss:$16 sps:$4 sm:$0xff]   ;;  %v736_v7 = vld [vmem:[#allocation3 + $0xc8] ss:$16 sps:$4 sm:$0xff]  }
  0x10   :  { %446 = vmatprep.subr.bf16.mxu0 %v731_v4  ;;  %487 = vmatprep.subr.bf16.mxu1 %v733_v5  ;;  %v737_v8 = vld [vmem:[#allocation3 + $0xa4] ss:$16 sps:$4 sm:$0xff]   ;;  %v739_v9 = vld [vmem:[#allocation3 + $0xac] ss:$16 sps:$4 sm:$0xff]   ;;  %v741_v10 = vld [vmem:[#allocation3 + $0xa0] ss:$16 sps:$4 sm:$0xff]  }
  0x11   :  { %v742_v11 = vld [vmem:[#allocation3 + $0xa8] ss:$16 sps:$4 sm:$0xff]   ;;  %v743_v12 = vld [vmem:[#allocation3 + $0x84] ss:$16 sps:$4 sm:$0xff]   ;;  %v745_v13 = vld [vmem:[#allocation3 + $0x8c] ss:$16 sps:$4 sm:$0xff]  }
  0x12   :  { %v747_v14 = vld [vmem:[#allocation3 + $0x80] ss:$16 sps:$4 sm:$0xff]   ;;  %v748_v15 = vld [vmem:[#allocation3 + $0x88] ss:$16 sps:$4 sm:$0xff]   ;;  %v749_v16 = vld [vmem:[#allocation3 + $0x64] ss:$16 sps:$4 sm:$0xff]  }
  0x13   :  { %447 = vmatpush1.bf16.msra.mxu0 %v735_v6  ;;  %488 = vmatpush1.bf16.msra.mxu1 %v736_v7  ;;  %v751_v17 = vld [vmem:[#allocation3 + $0x6c] ss:$16 sps:$4 sm:$0xff]   ;;  %v753_v18 = vld [vmem:[#allocation3 + $0x60] ss:$16 sps:$4 sm:$0xff]   ;;  %v754_v19 = vld [vmem:[#allocation3 + $0x68] ss:$16 sps:$4 sm:$0xff]  }
  0x14   :  { %448 = vmatprep.subr.bf16.mxu0 %v737_v8  ;;  %489 = vmatprep.subr.bf16.mxu1 %v739_v9  ;;  %v755_v20 = vld [vmem:[#allocation3 + $0x44] ss:$16 sps:$4 sm:$0xff]   ;;  %v757_v21 = vld [vmem:[#allocation3 + $0x4c] ss:$16 sps:$4 sm:$0xff]   ;;  %v759_v22 = vld [vmem:[#allocation3 + $0x40] ss:$16 sps:$4 sm:$0xff]  }
  0x15   :  { %v760_v23 = vld [vmem:[#allocation3 + $0x48] ss:$16 sps:$4 sm:$0xff]   ;;  %v761_v24 = vld [vmem:[#allocation3 + $0x24] ss:$16 sps:$4 sm:$0xff]   ;;  %v763_v25 = vld [vmem:[#allocation3 + $0x2c] ss:$16 sps:$4 sm:$0xff]  }
  0x16   :  { %v765_v26 = vld [vmem:[#allocation3 + $0x20] ss:$16 sps:$4 sm:$0xff]   ;;  %v766_v27 = vld [vmem:[#allocation3 + $0x28] ss:$16 sps:$4 sm:$0xff]   ;;  %v767_v28 = vld [vmem:[#allocation3 + $0x4] ss:$16 sps:$4 sm:$0xff]  }
  0x17   :  { %449 = vmatpush1.bf16.msra.mxu0 %v741_v10  ;;  %490 = vmatpush1.bf16.msra.mxu1 %v742_v11  ;;  %v769_v29 = vld [vmem:[#allocation3 + $0xc] ss:$16 sps:$4 sm:$0xff]   ;;  %v771_v30 = vld [vmem:[#allocation3] ss:$16 sps:$4 sm:$0xff]   ;;  %v772_v31 = vld [vmem:[#allocation3 + $0x8] ss:$16 sps:$4 sm:$0xff]  }
  0x18   :  { %450 = vmatprep.subr.bf16.mxu0 %v743_v12  ;;  %491 = vmatprep.subr.bf16.mxu1 %v745_v13  ;;  %v773_v32 = vld [vmem:[#allocation3 + $0x1e4] ss:$16 sps:$4 sm:$0xff]   ;;  %v775_v33 = vld [vmem:[#allocation3 + $0x1ec] ss:$16 sps:$4 sm:$0xff]   ;;  %v777_v34 = vld [vmem:[#allocation3 + $0x1e0] ss:$16 sps:$4 sm:$0xff]  }
  0x19   :  { %v778_v35 = vld [vmem:[#allocation3 + $0x1e8] ss:$16 sps:$4 sm:$0xff]   ;;  %v779_v36 = vld [vmem:[#allocation3 + $0x1c4] ss:$16 sps:$4 sm:$0xff]   ;;  %v781_v37 = vld [vmem:[#allocation3 + $0x1cc] ss:$16 sps:$4 sm:$0xff]  }
  0x1a   :  { %v846_v38 = vmov 1966171168   ;;  %v783_v41 = vld [vmem:[#allocation3 + $0x1c0] ss:$16 sps:$4 sm:$0xff]   ;;  %v784_v42 = vld [vmem:[#allocation3 + $0x1c8] ss:$16 sps:$4 sm:$0xff]  }
  0x1b   :  { %451 = vmatpush1.bf16.msra.mxu0 %v747_v14  ;;  %492 = vmatpush1.bf16.msra.mxu1 %v748_v15  ;;  %v109_v39 = vunpack.c.l.s4 %v846_v38  ;;  %v785_v43 = vld [vmem:[#allocation3 + $0x1a4] ss:$16 sps:$4 sm:$0xff]   ;;  %v787_v44 = vld [vmem:[#allocation3 + $0x1ac] ss:$16 sps:$4 sm:$0xff]   ;;  %v871_v46 = vshrl.u32 %v111_v40, 7 }
  0x1c   :  { %452 = vmatprep.subr.bf16.mxu0 %v749_v16  ;;  %493 = vmatprep.subr.bf16.mxu1 %v751_v17  ;;  %v789_v47 = vld [vmem:[#allocation3 + $0x1a0] ss:$16 sps:$4 sm:$0xff]   ;;  %v790_v48 = vld [vmem:[#allocation3 + $0x1a8] ss:$16 sps:$4 sm:$0xff]   ;;  %v791_v49 = vld [vmem:[#allocation3 + $0x184] ss:$16 sps:$4 sm:$0xff]  }
  0x1d   :  { %v110_v45 = vunpack.c.0.s8 %v109_v39  ;;  %v793_v50 = vld [vmem:[#allocation3 + $0x18c] ss:$16 sps:$4 sm:$0xff]   ;;  %v652_v52 = vld.sshfl [vmem:[%s894_s0] sm:$0x11 pattern:$0x75316420] }
  0x1e   :  { %v795_v53 = vld [vmem:[#allocation3 + $0x180] ss:$16 sps:$4 sm:$0xff]   ;;  %v796_v54 = vld [vmem:[#allocation3 + $0x188] ss:$16 sps:$4 sm:$0xff]   ;;  %v107_v55 = vcombine.high %v652_v52, %v652_v52  ;;  %v797_v56 = vld [vmem:[#allocation3 + $0x164] ss:$16 sps:$4 sm:$0xff]  }
  0x1f   :  { %453 = vmatpush1.bf16.msra.mxu0 %v753_v18  ;;  %494 = vmatpush1.bf16.msra.mxu1 %v754_v19  ;;  %v874_v51 = vsub.s32 %v110_v45, %v871_v46  ;;  %v799_v57 = vld [vmem:[#allocation3 + $0x16c] ss:$16 sps:$4 sm:$0xff]   ;;  %v801_v59 = vld [vmem:[#allocation3 + $0x160] ss:$16 sps:$4 sm:$0xff]   ;;  %v802_v60 = vld [vmem:[#allocation3 + $0x168] ss:$16 sps:$4 sm:$0xff]  }
  0x20   :  { %454 = vmatprep.subr.bf16.mxu0 %v755_v20  ;;  %495 = vmatprep.subr.bf16.mxu1 %v757_v21  ;;  %v803_v61 = vld [vmem:[#allocation3 + $0x144] ss:$16 sps:$4 sm:$0xff]   ;;  %v805_v62 = vld [vmem:[#allocation3 + $0x14c] ss:$16 sps:$4 sm:$0xff]   ;;  %v807_v63 = vld [vmem:[#allocation3 + $0x140] ss:$16 sps:$4 sm:$0xff]  }
  0x21   :  { %v121_v58 = vrot.slane %v107_v55, %v874_v51  ;;  %v808_v0 = vld [vmem:[#allocation3 + $0x148] ss:$16 sps:$4 sm:$0xff]   ;;  %v809_v1 = vld [vmem:[#allocation3 + $0x124] ss:$16 sps:$4 sm:$0xff]   ;;  %v811_v2 = vld [vmem:[#allocation3 + $0x12c] ss:$16 sps:$4 sm:$0xff]   ;;  %v114_v9 = vrot.slane %v652_v52, %v874_v51 }
  0x22   :  { %v813_v3 = vld [vmem:[#allocation3 + $0x120] ss:$16 sps:$4 sm:$0xff]   ;;  %v814_v4 = vld [vmem:[#allocation3 + $0x128] ss:$16 sps:$4 sm:$0xff]   ;;  %v815_v5 = vld [vmem:[#allocation3 + $0x104] ss:$16 sps:$4 sm:$0xff]  }
  0x23   :  { %455 = vmatpush1.bf16.msra.mxu0 %v759_v22  ;;  %496 = vmatpush1.bf16.msra.mxu1 %v760_v23  ;;  %v817_v6 = vld [vmem:[#allocation3 + $0x10c] ss:$16 sps:$4 sm:$0xff]   ;;  %v819_v7 = vld [vmem:[#allocation3 + $0x100] ss:$16 sps:$4 sm:$0xff]   ;;  %v820_v8 = vld [vmem:[#allocation3 + $0x108] ss:$16 sps:$4 sm:$0xff]  }
  0x24   :  { %456 = vmatprep.subr.bf16.mxu0 %v761_v24  ;;  %497 = vmatprep.subr.bf16.mxu1 %v763_v25  ;;  %v847_v10 = vmov 1983009808   ;;  %v558_v12 = vsub.s32 0, %v871_v46  ;;  %v562_v13 = vsub.s32 1, %v871_v46  ;;  %v566_v14 = vsub.s32 2, %v871_v46 }
  0x25   :  { %476 = vmatprep.mubr.bf16.mxu0 %v121_v58  ;;  %517 = vmatprep.mubr.bf16.mxu1 %v121_v58  ;;  %v533_v11 = vunpack.c.l.s4 %v847_v10  ;;  %v570_v15 = vsub.s32 3, %v871_v46  ;;  %v554_v16 = vld [vmem:[%s896_s2] sm:$0xf] }
  0x26   :  { %v559_v18 = vrot.slane %v554_v16, %v558_v12  ;;  %v563_v19 = vrot.slane %v554_v16, %v562_v13  ;;  %v567_v20 = vrot.slane %v554_v16, %v566_v14 }
  0x27   :  { %457 = vmatpush1.bf16.msra.mxu0 %v765_v26  ;;  %498 = vmatpush1.bf16.msra.mxu1 %v766_v27  ;;  %v534_v17 = vunpack.c.0.s8 %v533_v11  ;;  %v571_v21 = vrot.slane %v554_v16, %v570_v15 }
  0x28   :  { %458 = vmatprep.subr.bf16.mxu0 %v767_v28  ;;  %499 = vmatprep.subr.bf16.mxu1 %v769_v29  ;;  %v572_v23 = vcombine.low %v559_v18, %v563_v19 }
  0x29   :  { %v537_v22 = vsub.s32 %v534_v17, %v871_v46  ;;  %v573_v24 = vcombine.low %v567_v20, %v571_v21 }
  0x2b   :  { %459 = vmatpush1.bf16.msra.mxu0 %v771_v30  ;;  %500 = vmatpush1.bf16.msra.mxu1 %v772_v31  ;;  %v580_v27 = vrot.slane %v572_v23, %v537_v22  ;;  %v587_v28 = vrot.slane %v573_v24, %v537_v22 }
  0x2c   :  { %460 = vmatprep.subr.bf16.mxu0 %v773_v32  ;;  %501 = vmatprep.subr.bf16.mxu1 %v775_v33 }
  0x2f   :  { %461 = vmatpush2.bf16.msra.mxu0 %v777_v34  ;;  %502 = vmatpush2.bf16.msra.mxu1 %v778_v35 }
  0x30   :  { %462 = vmatprep.subr.bf16.mxu0 %v779_v36  ;;  %503 = vmatprep.subr.bf16.mxu1 %v781_v37  ;;  %v588_v37 = vcombine.low %v580_v27, %v587_v28 }
  0x33   :  { %463 = vmatpush2.bf16.msra.mxu0 %v783_v41  ;;  %504 = vmatpush2.bf16.msra.mxu1 %v784_v42 }
  0x34   :  { %464 = vmatprep.subr.bf16.mxu0 %v785_v43  ;;  %505 = vmatprep.subr.bf16.mxu1 %v787_v44 }
  0x37   :  { %465 = vmatpush2.bf16.msra.mxu0 %v789_v47  ;;  %506 = vmatpush2.bf16.msra.mxu1 %v790_v48 }
  0x38   :  { %466 = vmatprep.subr.bf16.mxu0 %v791_v49  ;;  %507 = vmatprep.subr.bf16.mxu1 %v793_v50 }
  0x3b   :  { %467 = vmatpush2.bf16.msra.mxu0 %v795_v53  ;;  %508 = vmatpush2.bf16.msra.mxu1 %v796_v54 }
  0x3c   :  { %468 = vmatprep.subr.bf16.mxu0 %v797_v56  ;;  %509 = vmatprep.subr.bf16.mxu1 %v799_v57 }
  0x3f   :  { %469 = vmatpush2.bf16.msra.mxu0 %v801_v59  ;;  %510 = vmatpush2.bf16.msra.mxu1 %v802_v60 }
  0x40   :  { %470 = vmatprep.subr.bf16.mxu0 %v803_v61  ;;  %511 = vmatprep.subr.bf16.mxu1 %v805_v62 }
  0x43   :  { %471 = vmatpush2.bf16.msra.mxu0 %v807_v63  ;;  %512 = vmatpush2.bf16.msra.mxu1 %v808_v0 }
  0x44   :  { %472 = vmatprep.subr.bf16.mxu0 %v809_v1  ;;  %513 = vmatprep.subr.bf16.mxu1 %v811_v2 }
  0x47   :  { %473 = vmatpush2.bf16.msra.mxu0 %v813_v3  ;;  %514 = vmatpush2.bf16.msra.mxu1 %v814_v4 }
  0x48   :  { %474 = vmatprep.subr.bf16.mxu0 %v815_v5  ;;  %515 = vmatprep.subr.bf16.mxu1 %v817_v6 }
  0x4b   :  { %475 = vmatpush2.bf16.msra.mxu0 %v819_v7  ;;  %516 = vmatpush2.bf16.msra.mxu1 %v820_v8 }
  0x4e   :  { %477 = vmatmul.mubr.bf16.vlgmr.msra.gmra.mxu0 %v114_v9  ;;  %518 = vmatmul.mubr.bf16.vlgmr.msra.gmra.mxu1 %v114_v9 }
 0x10e   :  { %v478_v25 = vpop.f32.mrf.mxu0  ;;  %v519_v26 = vpop.f32.mrf.mxu1 }
 0x110   :  { %v480_v29 = vpop.f32.mrf.mxu0  ;;  %v521_v30 = vpop.f32.mrf.mxu1 }
 0x111   :  { %v530_v31 = vcombine.low %v478_v25, %v480_v29  ;;  %v531_v32 = vcombine.low %v519_v26, %v521_v30 }
 0x112   :  { %v482_v33 = vpop.f32.mrf.mxu0  ;;  %v523_v34 = vpop.f32.mrf.mxu1 }
 0x113   :  { %v538_v35 = vrot.slane %v530_v31, %v537_v22  ;;  %v545_v36 = vrot.slane %v531_v32, %v537_v22 }
 0x114   :  { %v483_v38 = vpop.f32.mrf.mxu0  ;;  %v524_v39 = vpop.f32.mrf.mxu1 }
 0x115   :  { %v546_v40 = vcombine.low %v538_v35, %v545_v36 }
 0x117   :  { %v590_v41 = vadd.f32 %v588_v37, %v546_v40 }
 0x119   :  { %v592_v42 = vcombine.high %v590_v41, %v590_v41  ;;  %v599_v43 = vrot.slane %v590_v41, %v537_v22 }
 0x11b   :  { %v606_v44 = vrot.slane %v592_v42, %v537_v22  ;;  %v607_v45 = vcombine.high %v599_v43, %v599_v43 }
 0x11d   :  { %v608_v46 = vcombine.high %v606_v44, %v606_v44  ;;  %v717_v47 = vpack.c.bf16 %v607_v45, %v599_v43 }
 0x11f   :  { %v718_v48 = vpack.c.bf16 %v608_v46, %v606_v44  ;;  %v629_v49 = vrot.slane %v717_v47, %v874_v51 }
 0x121   :  { %v636_v50 = vrot.slane %v718_v48, %v874_v51 }
 0x123   :  { %v637_v52 = vcombine.low %v629_v49, %v636_v50 }
 0x125   :  { %719 = vst.sshfl [vmem:[%s897_s3] sm:$0x55 pattern:$0x73625140] %v637_v52 }
 0x126   :  { %651 = vsyncpa [#allocation4], 1 }

// kernel: _lambda_.6
= control target key start
LH: loop header
LB: loop body
LE: loop exit
PB: predicated region body
PF: predicated region fallthrough
CT: control target
= control target key end

     0   :  { %s852_s12 = smov 0   ;;  %s854_s13 = smov 0   ;;  %s1002_s0 = inlined_call_operand.vmem [shape: bf16[2,16,32], index: 0, kind: input, shape index: {}]   ;;  %s1003_s1 = inlined_call_operand.vmem [shape: bf16[2,32,128], index: 1, kind: input, shape index: {}]   ;;  %s1004_s2 = inlined_call_operand.vmem [shape: f32[1,16], index: 2, kind: input, shape index: {}]   ;;  %s1005_s3 = inlined_call_operand.vmem [shape: bf16[2,4,2,4,32], index: 3, kind: output, shape index: {}]  }
   0x1   :  { %s856_s14 = smov 0   ;;  %s858_s15 = smov 0  }
   0x2   :  { %s860_s16 = smov 0   ;;  %s862_s17 = smov 0  }
   0x3   :  { %s864_s18 = smov 0  }
   0x4 LB: > { %s22_s19 = sadd.s32 1, %s816_s16  ;;  %s25_s20 = sadd.s32 1, %s820_s17  ;;  %s824_s18 = sphi %s864_s18, %s13_s18   ;;  %s820_s17 = sphi %s862_s17, %s1012_s17   ;;  %s816_s16 = sphi %s860_s16, %s1011_s16   ;;  %s812_s15 = sphi %s858_s15, %s1010_s15   ;;  %s808_s14 = sphi %s856_s14, %s1009_s14   ;;  %s804_s13 = sphi %s854_s13, %s1008_s13   ;;  %s800_s12 = sphi %s852_s12, %s1007_s12  }
   0x5   : > { %p23_p0 = scmp.ge.s32.totalorder %s22_s19, 2  ;;  %s658_s21 = sadd.s32 4294967295, %s824_s18  }
   0x6   : > { %p117_p1 = scmp.ne.s32.totalorder %s804_s13, %s800_s12  ;;  %p118_p2 = scmp.eq.s32.totalorder %s658_s21, 3 }
   0x7   : > { %s1014_s19 = smov (%p23_p0, %s22_s19), 0  ;;  %s1016_s20 = smov (!%p23_p0, %s25_s20), %s820_s17 }
   0x8   : > { %s103_s22 = ssub.s32 %s816_s16, %s1014_s19  ;;  %p27_p3 = scmp.ge.s32.totalorder %s1016_s20, 2 }
   0x9   : > { %p662_p4 = scmp.ge.s32.totalorder %s824_s18, 1  ;;  %p898_p5 = por %p118_p2, %p117_p1 }
   0xa   : > { %p161_p6 = scmp.lt.s32.totalorder %s824_s18, 5  ;;  %s1018_s20 = smov (%p27_p3, %s1016_s20), 0 }
   0xb   : > { %s102_s24 = ssub.s32 %s820_s17, %s1018_s20  ;;  %s107_s26 = sadd.s32 1, %s804_s13 }
   0xc   : > { %p162_p7 = pnand %p662_p4, %p161_p6  ;;  %s104_s25 = sor.u32 %s103_s22, %s102_s24 }
   0xd   : > { %p105_p8 = scmp.eq.s32.totalorder %s104_s25, 0  ;;  %p194_p9 = scmp.lt.s32.totalorder (!%p162_p7), %s808_s14, 1 }
   0xe   : > { %165 = sbr.rel (%p162_p7) target bundleno = 514 (0x202), region = 32  ;;  %p189_p10 = scmp.lt.s32.totalorder (!%p162_p7), %s812_s15, 1 }
   0xf   : > { %s909_s27 = scalar_select %p105_p8, %s804_s13, %s107_s26  }
  0x10   : > { %s281_s11 = ssub.s32 (!%p162_p7), 1, %s808_s14  ;;  %s285_s21 = ssub.s32 (!%p162_p7), 2, %s808_s14 }
  0x11   : > { %s672_s22 = sshll.u32 (!%p162_p7), %s281_s11, 3  ;;  %s673_s24 = sshll.u32 (!%p162_p7), %s285_s21, 3 }
  0x12   : > { %s289_s25 = ssub.s32 (!%p162_p7), 3, %s808_s14  ;;  %s293_s26 = ssub.s32 (!%p162_p7), 4, %s808_s14 }
  0x13   : > { %v826_v0 = vmov 0.0   ;;  %vm827_vm0 = vmmov 0   ;;  %s195_s28 = scalar_select %p194_p9, %s808_s14, 1  ;;  %vm223_vm1 = vcmask 261120   ;;  %v944_v20 = vld [vmem:[%s1004_s2] ss:$0 sm:$0xff] }
  0x14   : > { %687 = vmatprep.subr.bf16.mxu0 %v826_v0  ;;  %268 = vst [vmem:[#allocation2] sm:$0x3f] %v826_v0  ;;  %270 = vst [vmem:[#allocation2 + $0x20] sm:$0x3f] %v826_v0  ;;  %691 = vmatprep.mubr.msk.bf16.mxu0 %vm827_vm0, %v826_v0  ;;  %s190_s29 = scalar_select %p189_p10, %s812_s15, 1  ;;  %vm496_vm10 = vcmask 130048  }
  0x15   : > { %272 = vst [vmem:[#allocation2 + $0x8] sm:$0x1] %v826_v0  ;;  %273 = vst [vmem:[#allocation2 + $0x10] sm:$0x1] %v826_v0  ;;  %s683_s30 = sshll.u32 %s195_s28, 4  ;;  %s674_s28 = sshll.u32 %s289_s25, 3 }
  0x16   : > { %274 = vst [vmem:[#allocation2 + $0x18] sm:$0x1] %v826_v0  ;;  %277 = vst [vmem:[#allocation2 + $0xd] sm:$0x1] %v826_v0  ;;  %s198_s6 = scalar_lea.vmem %s1003_s1, %s683_s30  ;;  %s682_s7 = sshll.u32 %s190_s29, 3  ;;  %vm505_vm11 = vcmask 254976  }
  0x17   : > { %278 = vst [vmem:[#allocation2 + $0x15] sm:$0x1] %v826_v0  ;;  %279 = vst [vmem:[#allocation2 + $0x1d] sm:$0x1] %v826_v0  ;;  %v767_v1 = vld [vmem:[%s198_s6 + $0x8] sm:$0xff]   ;;  %s193_s10 = scalar_lea.vmem %s1002_s0, %s682_s7  ;;  %v768_v2 = vld [vmem:[%s198_s6] sm:$0xff]  }
  0x18   : > { %271 = vst [vmem:[#allocation2] sm:$0x1] %v826_v0  ;;  %275 = vst [vmem:[#allocation2 + $0x20] sm:$0x1] %v826_v0  ;;  %688 = vmatpush3.bf16.msra.mxu0 %v767_v1  ;;  %v769_v3 = vld [vmem:[%s193_s10] sm:$0xff]   ;;  %s675_s29 = sshll.u32 %s293_s26, 3 }
  0x19   : > { %276 = vst [vmem:[#allocation2 + $0x5] sm:$0x1] %v826_v0  ;;  %280 = vst [vmem:[#allocation2 + $0x25] sm:$0x1] %v826_v0  ;;  %689 = vmatprep.subr.bf16.mxu0 %v826_v0  ;;  %s283_s30 = scalar_lea.vmem [#allocation2], %s672_s22  ;;  %s287_s4 = scalar_lea.vmem [#allocation2], %s673_s24 }
  0x1a   : > { %s291_s5 = scalar_lea.vmem [#allocation2], %s674_s28  ;;  %s295_s6 = scalar_lea.vmem [#allocation2], %s675_s29 }
  0x1b   : > { %s828_s7 = smov 112   ;;  %s829_s8 = smov 96  }
  0x1c   : > { %690 = vmatpush3.bf16.msra.mxu0 %v768_v2  ;;  %s830_s9 = smov 80   ;;  %s831_s21 = smov 64  }
  0x1d   : > { %s186_s22 = sand.u32 1, %s800_s12   ;;  %s678_s25 = sshll.u32 (%p898_p5), %s812_s15, 3 }
  0x1e   : > { %s663_s24 = sshll.u32 %s186_s22, 3  ;;  %s518_s26 = sadd.s32 (%p898_p5), %s808_s14, %s678_s25 }
  0x1f   : > { %692 = vmatmul.mubr.msk.bf16.vlgmr.msra.gmra.mxu0 %vm223_vm1, %v769_v3  ;;  %s188_s12 = scalar_lea.vmem [#allocation3], %s663_s24  ;;  %s679_s28 = sshll.u32 (%p898_p5), %s518_s26, 1 }
  0xdf   : > { %v261_v4 = vpop.f32.mrf.mxu0 }
  0xe0   : > { %284 = vst [vmem:[%s283_s30 + $0x1] sm:$0xf] %v261_v4 }
  0xe1   : > { %v693_v5 = vpop.f32.mrf.mxu0  ;;  %288 = vst [vmem:[%s287_s4 - $0x3] sm:$0xf0] %v261_v4  ;;  %s520_s4 = scalar_lea.vmem (%p898_p5), %s1005_s3, %s679_s28 }
  0xe3   : > { %v264_v6 = vpop.f32.mrf.mxu0 }
  0xe4   : > { %292 = vst [vmem:[%s291_s5 + $0x1] sm:$0xf] %v264_v6 }
  0xe5   : > { %v694_v7 = vpop.f32.mrf.mxu0  ;;  %296 = vst [vmem:[%s295_s6 - $0x3] sm:$0xf0] %v264_v6 }
  0xec   : > { %v399_v8 = vld [vmem:[#allocation2 + $0x12] sm:$0xf]  ;;  %v397_v9 = vld [vmem:[#allocation2 + $0x2] sm:$0xf]  ;;  %v400_v10 = vld [vmem:[#allocation2 + $0x1a] sm:$0xf] }
  0xed   : > { %409 = vrot.lane.b32.xlu1 %v399_v8, %s828_s7  ;;  %405 = vrot.lane.b32.xlu0 %v397_v9, %s828_s7  ;;  %v398_v11 = vld [vmem:[#allocation2 + $0xa] sm:$0xf]  ;;  %v352_v12 = vld [vmem:[#allocation2 + $0x11] sm:$0xf]  ;;  %v354_v14 = vld [vmem:[#allocation2 + $0x21] sm:$0xf] }
  0xee   : > { %v351_v13 = vld [vmem:[#allocation2 + $0x9] sm:$0xf]  ;;  %v353_v15 = vld [vmem:[#allocation2 + $0x19] sm:$0xf]  ;;  %v438_v16 = vld [vmem:[#allocation2 + $0x12] sm:$0xf] }
  0xef   : > { %v437_v17 = vld [vmem:[#allocation2 + $0xa] sm:$0xf]  ;;  %v440_v18 = vld [vmem:[#allocation2 + $0x22] sm:$0xf]  ;;  %v439_v19 = vld [vmem:[#allocation2 + $0x1a] sm:$0xf] }
  0xf0   : > { %v302_v21 = vld [vmem:[#allocation2 + $0x1] sm:$0xf]  ;;  %v303_v22 = vld [vmem:[#allocation2 + $0x9] sm:$0xf]  ;;  %v304_v23 = vld [vmem:[#allocation2 + $0x11] sm:$0xf] }
  0xf1   : > { %411 = vrot.lane.b32.xlu1 %v400_v10, %s828_s7  ;;  %407 = vrot.lane.b32.xlu0 %v398_v11, %s828_s7  ;;  %v305_v24 = vld [vmem:[#allocation2 + $0x19] sm:$0xf]  ;;  %v327_v25 = vld [vmem:[#allocation2 + $0x8] sm:$0xf]  ;;  %v328_v26 = vld [vmem:[#allocation2 + $0x10] sm:$0xf] }
  0xf2   : > { %v329_v27 = vld [vmem:[#allocation2 + $0x18] sm:$0xf]  ;;  %v330_v28 = vld [vmem:[#allocation2 + $0x20] sm:$0xf] }
  0xf5   : > { %423 = vrot.lane.b32.xlu1 %v352_v12, %s829_s8  ;;  %421 = vrot.lane.b32.xlu0 %v351_v13, %s829_s8 }
  0xf9   : > { %427 = vrot.lane.b32.xlu1 %v354_v14, %s829_s8  ;;  %425 = vrot.lane.b32.xlu0 %v353_v15, %s829_s8 }
  0xfd   : > { %447 = vrot.lane.b32.xlu1 %v438_v16, %s830_s9  ;;  %445 = vrot.lane.b32.xlu0 %v437_v17, %s830_s9  ;;  %v298_v16 = vld [vmem:[#allocation2] sm:$0xf]  ;;  %v299_v17 = vld [vmem:[#allocation2 + $0x8] sm:$0xf] }
 0x101   : > { %451 = vrot.lane.b32.xlu1 %v440_v18, %s830_s9  ;;  %449 = vrot.lane.b32.xlu0 %v439_v19, %s830_s9 }
 0x105   : > { %461 = vrot.lane.b32.xlu0 %v944_v20, %s831_s21  ;;  %310 = vrot.lane.b32.xlu1 %v302_v21, %s828_s7 }
 0x109   : > { %312 = vrot.lane.b32.xlu0 %v303_v22, %s828_s7  ;;  %314 = vrot.lane.b32.xlu1 %v304_v23, %s828_s7 }
 0x10d   : > { %316 = vrot.lane.b32.xlu0 %v305_v24, %s828_s7  ;;  %335 = vrot.lane.b32.xlu1 %v327_v25, %s829_s8 }
 0x111   : > { %337 = vrot.lane.b32.xlu0 %v328_v26, %s829_s8  ;;  %339 = vrot.lane.b32.xlu1 %v329_v27, %s829_s8 }
 0x115   : > { %341 = vrot.lane.b32.xlu0 %v330_v28, %s829_s8  ;;  %359 = vrot.lane.b32.xlu1 %v351_v13, %s830_s9 }
 0x119   : > { %361 = vrot.lane.b32.xlu0 %v352_v12, %s830_s9  ;;  %363 = vrot.lane.b32.xlu1 %v353_v15, %s830_s9  ;;  %v301_v15 = vld [vmem:[#allocation2 + $0x18] sm:$0xf] }
 0x11d   : > { %365 = vrot.lane.b32.xlu0 %v354_v14, %s830_s9  ;;  %v300_v14 = vld [vmem:[#allocation2 + $0x10] sm:$0xf] }
 0x15f   : > { %v410_v29 = vpop.permute.xlu1 %409  ;;  %v406_v30 = vpop.permute.xlu0 %405 }
 0x160   : > { %v419_v39 = vadd.f32 %v410_v29, %v304_v23  ;;  %v417_v40 = vadd.f32 %v406_v30, %v302_v21 }
 0x163   : > { %v412_v31 = vpop.permute.xlu1 %411  ;;  %v408_v32 = vpop.permute.xlu0 %407 }
 0x164   : > { %v420_v41 = vadd.f32 %v412_v31, %v305_v24  ;;  %v418_v42 = vadd.f32 %v408_v32, %v303_v22 }
 0x167   : > { %v424_v33 = vpop.permute.xlu1 %423  ;;  %v422_v34 = vpop.permute.xlu0 %421 }
 0x168   : > { %v434_v45 = vadd.f32 %v424_v33, %v418_v42  ;;  %v433_v46 = vadd.f32 %v422_v34, %v417_v40 }
 0x16b   : > { %v428_v35 = vpop.permute.xlu1 %427  ;;  %v426_v36 = vpop.permute.xlu0 %425 }
 0x16c   : > { %v436_v47 = vadd.f32 %v428_v35, %v420_v41  ;;  %v435_v48 = vadd.f32 %v426_v36, %v419_v39 }
 0x16f   : > { %v448_v37 = vpop.permute.xlu1 %447  ;;  %v446_v38 = vpop.permute.xlu0 %445 }
 0x170   : > { %v458_v49 = vadd.f32 %v448_v37, %v434_v45  ;;  %v457_v50 = vadd.f32 %v446_v38, %v433_v46 }
 0x173   : > { %v452_v43 = vpop.permute.xlu1 %451  ;;  %v450_v44 = vpop.permute.xlu0 %449 }
 0x174   : > { %v460_v51 = vadd.f32 %v452_v43, %v436_v47  ;;  %v459_v52 = vadd.f32 %v450_v44, %v435_v48 }
 0x177   : > { %v462_v53 = vpop.permute.xlu0 %461  ;;  %v311_v4 = vpop.permute.xlu1 %310 }
 0x178   : > { %v464_v54 = vadd.f32 %v462_v53, %v457_v50  ;;  %v465_v55 = vadd.f32 %v462_v53, %v458_v49  ;;  %v466_v56 = vadd.f32 %v462_v53, %v459_v52  ;;  %v467_v57 = vadd.f32 %v462_v53, %v460_v51 }
 0x179   : > { %v322_v21 = vadd.f32 %v311_v4, %v298_v16 }
 0x17a   : > { %vm470_vm2 = vcmp.gt.f32.partialorder %v466_v56, 0.0  ;;  %vm471_vm3 = vcmp.gt.f32.partialorder %v467_v57, 0.0  ;;  %v474_v58 = vmul.f32 0.01, %v466_v56  ;;  %v475_v59 = vmul.f32 0.01, %v467_v57 }
 0x17b   : > { %vm468_vm4 = vcmp.gt.f32.partialorder %v464_v54, 0.0  ;;  %vm469_vm5 = vcmp.gt.f32.partialorder %v465_v55, 0.0  ;;  %v472_v60 = vmul.f32 0.01, %v464_v54  ;;  %v473_v61 = vmul.f32 0.01, %v465_v55  ;;  %v313_v5 = vpop.permute.xlu0 %312  ;;  %v315_v6 = vpop.permute.xlu1 %314 }
 0x17c   : > { %v478_v62 = vsel %vm470_vm2, %v466_v56, %v474_v58  ;;  %v479_v63 = vsel %vm471_vm3, %v467_v57, %v475_v59  ;;  %v324_v18 = vadd.f32 %v315_v6, %v300_v14  ;;  %v323_v22 = vadd.f32 %v313_v5, %v299_v17 }
 0x17d   : > { %v762_v0 = vpack.i.bf16 %v479_v63, %v478_v62  ;;  %v476_v1 = vsel %vm468_vm4, %v464_v54, %v472_v60  ;;  %v477_v2 = vsel %vm469_vm5, %v465_v55, %v473_v61 }
 0x17e   : > { %v757_v3 = vpack.i.bf16 %v477_v2, %v476_v1 }
 0x17f   : > { %763 = vrot.lane.b32.xlu0 %v762_v0, %s830_s9  ;;  %v317_v7 = vpop.permute.xlu0 %316  ;;  %v336_v8 = vpop.permute.xlu1 %335 }
 0x180   : > { %758 = vrot.lane.b32.xlu1 %v757_v3, %s830_s9  ;;  %v325_v19 = vadd.f32 %v317_v7, %v301_v15  ;;  %v347_v27 = vadd.f32 %v336_v8, %v322_v21 }
 0x183   : > { %v338_v9 = vpop.permute.xlu0 %337  ;;  %v340_v10 = vpop.permute.xlu1 %339 }
 0x184   : > { %v349_v25 = vadd.f32 %v340_v10, %v324_v18  ;;  %v348_v28 = vadd.f32 %v338_v9, %v323_v22 }
 0x187   : > { %v342_v11 = vpop.permute.xlu0 %341  ;;  %v360_v12 = vpop.permute.xlu1 %359 }
 0x188   : > { %v350_v26 = vadd.f32 %v342_v11, %v325_v19  ;;  %v371_v31 = vadd.f32 %v360_v12, %v347_v27 }
 0x18a   : > { %v381_v35 = vadd.f32 %v944_v20, %v371_v31 }
 0x18b   : > { %v362_v13 = vpop.permute.xlu0 %361  ;;  %v364_v23 = vpop.permute.xlu1 %363 }
 0x18c   : > { %v373_v29 = vadd.f32 %v364_v23, %v349_v25  ;;  %v372_v32 = vadd.f32 %v362_v13, %v348_v28  ;;  %v389_v39 = vmul.f32 0.01, %v381_v35  ;;  %vm385_vm8 = vcmp.gt.f32.partialorder %v381_v35, 0.0 }
 0x18e   : > { %v383_v33 = vadd.f32 %v944_v20, %v373_v29  ;;  %v382_v36 = vadd.f32 %v944_v20, %v372_v32  ;;  %v393_v48 = vsel %vm385_vm8, %v381_v35, %v389_v39 }
 0x18f   : > { %v366_v24 = vpop.permute.xlu0 %365 }
 0x190   : > { %v374_v30 = vadd.f32 %v366_v24, %v350_v26  ;;  %v391_v37 = vmul.f32 0.01, %v383_v33  ;;  %v390_v40 = vmul.f32 0.01, %v382_v36  ;;  %vm387_vm6 = vcmp.gt.f32.partialorder %v383_v33, 0.0 }
 0x191   : > { %vm386_vm9 = vcmp.gt.f32.partialorder %v382_v36, 0.0 }
 0x192   : > { %v384_v34 = vadd.f32 %v944_v20, %v374_v30  ;;  %v395_v45 = vsel %vm387_vm6, %v383_v33, %v391_v37  ;;  %v394_v49 = vsel %vm386_vm9, %v382_v36, %v390_v40 }
 0x194   : > { %v392_v38 = vmul.f32 0.01, %v384_v34  ;;  %vm388_vm7 = vcmp.gt.f32.partialorder %v384_v34, 0.0 }
 0x196   : > { %v396_v46 = vsel %vm388_vm7, %v384_v34, %v392_v38 }
 0x1f1   : > { %v764_v41 = vpop.permute.xlu0 %763 }
 0x1f2   : > { %v766_v42 = vunpack.i.h.bf16 %v764_v41  ;;  %v765_v43 = vunpack.i.l.bf16 %v764_v41  ;;  %v759_v44 = vpop.permute.xlu1 %758 }
 0x1f3   : > { %v761_v47 = vunpack.i.h.bf16 %v759_v44  ;;  %v760_v20 = vunpack.i.l.bf16 %v759_v44 }
 0x1f4   : > { %v499_v50 = vsel %vm496_vm10, %v395_v45, %v765_v43  ;;  %v500_v51 = vsel %vm496_vm10, %v396_v46, %v766_v42  ;;  %516 = sbr.rel (!%p898_p5) target bundleno = 514 (0x202), region = 36 }
 0x1f5   : > { %v503_v52 = vpack.c.bf16 %v499_v50, %v499_v50  ;;  %v504_v53 = vpack.c.bf16 %v500_v51, %v500_v51  ;;  %v497_v54 = vsel %vm496_vm10, %v393_v48, %v760_v20  ;;  %v498_v55 = vsel %vm496_vm10, %v394_v49, %v761_v47 }
 0x1f6   : > { %v501_v56 = vpack.c.bf16 %v497_v54, %v497_v54  ;;  %v502_v57 = vpack.c.bf16 %v498_v55, %v498_v55 }
 0x1f7   : > { %508 = vst.msk [vmem:[%s188_s12 + $0x4] sm:$0x3] %vm505_vm11, %v503_v52  ;;  %509 = vst.msk [vmem:[%s188_s12 + $0x6] sm:$0x3] %vm505_vm11, %v504_v53 }
 0x1f8   : > { %506 = vst.msk [vmem:[%s188_s12] sm:$0x3] %vm505_vm11, %v501_v56  ;;  %507 = vst.msk [vmem:[%s188_s12 + $0x2] sm:$0x3] %vm505_vm11, %v502_v57 }
 0x1fe   : > { %v541_v60 = vld [vmem:[%s188_s12 + $0x4] sm:$0x3]  ;;  %v543_v61 = vld [vmem:[%s188_s12 + $0x6] sm:$0x3] }
 0x1ff   : > { %v537_v58 = vld [vmem:[%s188_s12] sm:$0x3]  ;;  %v539_v59 = vld [vmem:[%s188_s12 + $0x2] sm:$0x3]  ;;  %542 = vst [vmem:[%s520_s4 + $0x8] sm:$0x3] %v541_v60 }
 0x200   : > { %538 = vst [vmem:[%s520_s4] sm:$0x3] %v537_v58  ;;  %540 = vst [vmem:[%s520_s4 + $0x4] sm:$0x3] %v539_v59 }
 0x201   : > { %544 = vst [vmem:[%s520_s4 + $0xc] sm:$0x3] %v543_v61 }
 0x202 PF: > { %s13_s18 = sadd.s32 1, %s824_s18   ;;  %s1007_s12 = smov %s804_s13 }
 0x203   : > { %p10_p11 = scmp.ge.s32.totalorder %s13_s18, 6   ;;  %s1008_s13 = smov %s909_s27 }
 0x204   : > { %s1009_s14 = smov %s816_s16  ;;  %s1010_s15 = smov %s820_s17 }
 0x205   : > { %s1011_s16 = smov %s1014_s19  ;;  %s1012_s17 = smov %s1018_s20 }
 0x206   :  { %12 = sbr.rel (!%p10_p11) target bundleno = 4 (0x4), region = 112 }

// kernel: _lambda_.7
= control target key start
LH: loop header
LB: loop body
LE: loop exit
PB: predicated region body
PF: predicated region fallthrough
CT: control target
= control target key end

     0   :  { %s1587_s18 = smov 0   ;;  %s1589_s19 = smov 0   ;;  %s2117_s0 = inlined_call_operand.vmem [shape: bf16[2,64,16], index: 0, kind: input, shape index: {}]   ;;  %s2118_s1 = inlined_call_operand.vmem [shape: bf16[2,16,64], index: 1, kind: input, shape index: {}]   ;;  %s2119_s2 = inlined_call_operand.vmem [shape: f32[1,8], index: 2, kind: input, shape index: {}]   ;;  %s2120_s3 = inlined_call_operand.vmem [shape: f32[8,3], index: 3, kind: input, shape index: {}]   ;;  %s2121_s4 = inlined_call_operand.vmem [shape: f32[1,3], index: 4, kind: input, shape index: {}]   ;;  %s2122_s5 = inlined_call_operand.vmem [shape: f32[2,2,64,6], index: 5, kind: output, shape index: {}]  }
   0x1   :  { %s1591_s20 = smov 0   ;;  %s1593_s21 = smov 0  }
   0x2   :  { %s1595_s22 = smov 0  }
   0x3 LB: > { %s24_s23 = sadd.s32 1, %s1537_s20  ;;  %s27_s24 = sadd.s32 1, %s1541_s21  ;;  %s1545_s22 = sphi %s1595_s22, %s15_s22   ;;  %s1541_s21 = sphi %s1593_s21, %s2128_s21   ;;  %s1537_s20 = sphi %s1591_s20, %s2127_s20   ;;  %s1533_s19 = sphi %s1589_s19, %s2126_s19   ;;  %s1529_s18 = sphi %s1587_s18, %s2125_s18  }
   0x4   : > { %p25_p0 = scmp.ge.s32.totalorder %s24_s23, 2  ;;  %p1376_p1 = scmp.ge.s32.totalorder %s1545_s22, 1 }
   0x5   : > { %p211_p2 = scmp.lt.s32.totalorder %s1545_s22, 5 }
   0x6   : > { %s2130_s23 = smov (%p25_p0, %s24_s23), 0  ;;  %s2132_s24 = smov (!%p25_p0, %s27_s24), %s1541_s21 }
   0x7   : > { %p212_p3 = pnand %p1376_p1, %p211_p2  ;;  %p29_p4 = scmp.ge.s32.totalorder %s2132_s24, 2 }
   0x9   : > { %s2134_s24 = smov (%p29_p4, %s2132_s24), 0  ;;  %215 = sbr.rel (%p212_p3) target bundleno = 897 (0x381), region = 40 }
   0xe   : > { %p248_p5 = scmp.lt.s32.totalorder %s1533_s19, 1  ;;  %p253_p6 = scmp.lt.s32.totalorder %s1529_s18, 1  ;;  %v420_v0 = vld [vmem:[%s2120_s3] sm:$0xff]  ;;  %v1547_v1 = vmov 0   ;;  %v1548_v2 = vmov 1   ;;  %vm304_vm0 = vcmask 130048  }
   0xf   : > { %1467 = vset.pattern.permute.xlu0 %v1547_v1  ;;  %1468 = vset.pattern.permute.xlu1 %v1548_v2  ;;  %vm382_vm1 = vcmask 523264   ;;  %vm384_vm2 = vcmask 517120   ;;  %v1549_v8 = vmov 0.0   ;;  %vm389_vm3 = vcmask 516096   ;;  %v1655_v10 = vld [vmem:[%s2119_s2] ss:$0 sm:$0xff] }
  0x10   : > { %s2136_s19 = smov (!%p248_p5, %s1533_s19), 1  ;;  %615 = vperm.xlu0 %1467, %v420_v0   ;;  %670 = vperm.xlu1 %1468, %v420_v0   ;;  %383 = vst.msk [vmem:[#allocation2] sm:$0xff] %vm382_vm1, %v1549_v8  ;;  %387 = vst.msk [vmem:[#allocation2 + $0x80] sm:$0xff] %vm382_vm1, %v1549_v8  ;;  %v1550_v9 = vmov 2   ;;  %s1551_s15 = smov 32  }
  0x11   : > { %s254_s27 = scalar_select %p253_p6, %s1529_s18, 1  ;;  %385 = vst.msk [vmem:[#allocation2 + $0x8] sm:$0x3] %vm384_vm2, %v1549_v8  ;;  %388 = vst.msk [vmem:[#allocation2 + $0x88] sm:$0x3] %vm384_vm2, %v1549_v8 }
  0x12   : > { %s1398_s28 = sshll.u32 %s2136_s19, 5  ;;  %s1382_s29 = sshll.u32 %s2136_s19, 4  ;;  %390 = vst.msk [vmem:[#allocation2] sm:$0x1] %vm389_vm3, %v1549_v8  ;;  %391 = vst.msk [vmem:[#allocation2 + $0x10] sm:$0x1] %vm389_vm3, %v1549_v8 }
  0x13   : > { %s252_s7 = scalar_lea.vmem %s2117_s0, %s1398_s28  ;;  %s1399_s8 = sshll.u32 %s254_s27, 3  ;;  %392 = vst.msk [vmem:[#allocation2 + $0x20] sm:$0x1] %vm389_vm3, %v1549_v8  ;;  %393 = vst.msk [vmem:[#allocation2 + $0x30] sm:$0x1] %vm389_vm3, %v1549_v8 }
  0x14   : > { %s257_s11 = scalar_lea.vmem %s2118_s1, %s1399_s8  ;;  %s1630_s12 = sadd.s32 %s1399_s8, %s1382_s29  ;;  %v1471_v3 = vld [vmem:[%s252_s7] sm:$0xff]   ;;  %v1472_v5 = vld [vmem:[%s252_s7 + $0x10] sm:$0xff]   ;;  %v1473_v6 = vld [vmem:[%s252_s7 + $0x8] sm:$0xff]   ;;  %394 = vst.msk [vmem:[#allocation2 + $0x40] sm:$0x1] %vm389_vm3, %v1549_v8  ;;  %1469 = vset.pattern.permute.xlu0 %v1550_v9  ;;  %929 = vrot.lane.b32.xlu1 %v1655_v10, %s1551_s15 }
  0x15   : > { %v1470_v4 = vld [vmem:[%s257_s11] sm:$0xff]   ;;  %1407 = vmatprep.mubr.msk.bf16.mxu0 %vm304_vm0, %v1471_v3  ;;  %v1474_v7 = vld [vmem:[%s252_s7 + $0x18] sm:$0xff]   ;;  %1411 = vmatprep.mubr.msk.bf16.mxu1 %vm304_vm0, %v1472_v5  ;;  %395 = vst.msk [vmem:[#allocation2 + $0x50] sm:$0x1] %vm389_vm3, %v1549_v8  ;;  %396 = vst.msk [vmem:[#allocation2 + $0x60] sm:$0x1] %vm389_vm3, %v1549_v8 }
  0x16   : > { %1405 = vmatprep.subr.bf16.mxu0 %v1470_v4  ;;  %1415 = vmatprep.subr.bf16.mxu1 %v1470_v4  ;;  %397 = vst.msk [vmem:[#allocation2 + $0x70] sm:$0x1] %vm389_vm3, %v1549_v8  ;;  %398 = vst.msk [vmem:[#allocation2 + $0x80] sm:$0x1] %vm389_vm3, %v1549_v8  ;;  %s408_s16 = ssub.s32 1, %s1529_s18  ;;  %s1552_s18 = smov 120  }
  0x17   : > { %1406 = vmatpush3.bf16.msra.mxu0 %v1470_v4  ;;  %1416 = vmatpush3.bf16.msra.mxu1 %v1470_v4  ;;  %399 = vst.msk [vmem:[#allocation2 + $0x9] sm:$0x1] %vm389_vm3, %v1549_v8  ;;  %400 = vst.msk [vmem:[#allocation2 + $0x19] sm:$0x1] %vm389_vm3, %v1549_v8  ;;  %s1393_s17 = sshll.u32 %s408_s16, 4  ;;  %s1553_s25 = smov 112  }
  0x18   : > { %401 = vst.msk [vmem:[#allocation2 + $0x29] sm:$0x1] %vm389_vm3, %v1549_v8  ;;  %402 = vst.msk [vmem:[#allocation2 + $0x39] sm:$0x1] %vm389_vm3, %v1549_v8  ;;  %716 = vperm.xlu0 %1469, %v420_v0   ;;  %s410_s19 = scalar_lea.vmem [#allocation2], %s1393_s17  ;;  %s1554_s26 = smov 104  }
  0x19   : > { %403 = vst.msk [vmem:[#allocation2 + $0x49] sm:$0x1] %vm389_vm3, %v1549_v8  ;;  %404 = vst.msk [vmem:[#allocation2 + $0x59] sm:$0x1] %vm389_vm3, %v1549_v8  ;;  %s1555_s27 = smov 96   ;;  %s1556_s30 = smov 3  }
  0x1a   : > { %1408 = vmatmul.mubr.msk.bf16.vlgmr.msra.gmra.mxu0 %vm304_vm0, %v1473_v6  ;;  %1412 = vmatmul.mubr.msk.bf16.vlgmr.msra.gmra.mxu1 %vm304_vm0, %v1474_v7  ;;  %405 = vst.msk [vmem:[#allocation2 + $0x69] sm:$0x1] %vm389_vm3, %v1549_v8  ;;  %406 = vst.msk [vmem:[#allocation2 + $0x79] sm:$0x1] %vm389_vm3, %v1549_v8  ;;  %s1383_s6 = sshll.u32 %s1630_s12, 3 }
  0x1b   : > { %407 = vst.msk [vmem:[#allocation2 + $0x89] sm:$0x1] %vm389_vm3, %v1549_v8  ;;  %vm644_vm3 = vcmask 64512   ;;  %s2075_s9 = scalar_lea.vmem %s2122_s5, %s1383_s6 }
  0x8b   : > { %v1774_v45 = vpop.permute.xlu1 %670  ;;  %v1776_v46 = vpop.permute.xlu0 %615 }
  0x8f   : > { %v1780_v48 = vpop.permute.xlu1 %929 }
  0x93   : > { %v1778_v47 = vpop.permute.xlu0 %716 }
  0xda   : > { %v1409_v11 = vpop.f32.mrf.mxu0  ;;  %v1413_v12 = vpop.f32.mrf.mxu1 }
  0xdb   : > { %413 = vst.msk [vmem:[%s410_s19 + $0x21] sm:$0xff] %vm382_vm1, %v1409_v11  ;;  %417 = vst.msk [vmem:[%s410_s19 + $0x61] sm:$0xff] %vm382_vm1, %v1413_v12 }
  0xdc   : > { %v351_v13 = vpop.f32.mrf.mxu0  ;;  %v367_v14 = vpop.f32.mrf.mxu1 }
  0xdd   : > { %411 = vst.msk [vmem:[%s410_s19 + $0x1] sm:$0xff] %vm382_vm1, %v351_v13  ;;  %415 = vst.msk [vmem:[%s410_s19 + $0x41] sm:$0xff] %vm382_vm1, %v367_v14 }
  0xde   : > { %v1410_v15 = vpop.f32.mrf.mxu0  ;;  %v1414_v16 = vpop.f32.mrf.mxu1 }
  0xdf   : > { %414 = vst.msk [vmem:[%s410_s19 + $0x31] sm:$0xff] %vm382_vm1, %v1410_v15  ;;  %418 = vst.msk [vmem:[%s410_s19 + $0x71] sm:$0xff] %vm382_vm1, %v1414_v16 }
  0xe0   : > { %v354_v17 = vpop.f32.mrf.mxu0  ;;  %v370_v18 = vpop.f32.mrf.mxu1 }
  0xe1   : > { %412 = vst.msk [vmem:[%s410_s19 + $0x11] sm:$0xff] %vm382_vm1, %v354_v17  ;;  %416 = vst.msk [vmem:[%s410_s19 + $0x51] sm:$0xff] %vm382_vm1, %v370_v18 }
  0xe8   : > { %v1667_v19 = vld [vmem:[#allocation2 + $0x21] sm:$0xff]  ;;  %v1675_v21 = vld [vmem:[#allocation2 + $0x31] sm:$0xff] }
  0xe9   : > { %v1669_v20 = vld [vmem:[#allocation2 + $0x1] sm:$0xff]  ;;  %450 = vrot.lane.b32.xlu1 %v1667_v19, %s1552_s18  ;;  %v1677_v22 = vld [vmem:[#allocation2 + $0x11] sm:$0xff] }
  0xea   : > { %446 = vrot.lane.b32.xlu0 %v1669_v20, %s1552_s18  ;;  %v1683_v23 = vld [vmem:[#allocation2 + $0x51] sm:$0xff]  ;;  %v1685_v24 = vld [vmem:[#allocation2 + $0x41] sm:$0xff] }
  0xeb   : > { %v1691_v25 = vld [vmem:[#allocation2 + $0x71] sm:$0xff]  ;;  %v1693_v26 = vld [vmem:[#allocation2 + $0x61] sm:$0xff] }
  0xec   : > { %v1699_v27 = vld [vmem:[#allocation2 + $0x20] sm:$0xff]  ;;  %v1701_v28 = vld [vmem:[#allocation2 + $0x10] sm:$0xff] }
  0xed   : > { %452 = vrot.lane.b32.xlu1 %v1675_v21, %s1552_s18  ;;  %v1707_v29 = vld [vmem:[#allocation2 + $0x40] sm:$0xff]  ;;  %v1709_v30 = vld [vmem:[#allocation2 + $0x30] sm:$0xff] }
  0xee   : > { %448 = vrot.lane.b32.xlu0 %v1677_v22, %s1552_s18  ;;  %v1715_v31 = vld [vmem:[#allocation2 + $0x60] sm:$0xff]  ;;  %v1717_v32 = vld [vmem:[#allocation2 + $0x50] sm:$0xff] }
  0xef   : > { %v486_v33 = vld [vmem:[#allocation2 + $0x80] sm:$0xff]  ;;  %v1723_v34 = vld [vmem:[#allocation2 + $0x70] sm:$0xff] }
  0xf0   : > { %v534_v35 = vld [vmem:[#allocation2 + $0x81] sm:$0xff]  ;;  %v804_v37 = vld [vmem:[#allocation2 + $0x32] sm:$0xff] }
  0xf1   : > { %456 = vrot.lane.b32.xlu1 %v1683_v23, %s1552_s18  ;;  %v801_v36 = vld [vmem:[#allocation2 + $0x2] sm:$0xff]  ;;  %v802_v38 = vld [vmem:[#allocation2 + $0x12] sm:$0xff] }
  0xf2   : > { %454 = vrot.lane.b32.xlu0 %v1685_v24, %s1552_s18  ;;  %v806_v39 = vld [vmem:[#allocation2 + $0x52] sm:$0xff]  ;;  %v803_v40 = vld [vmem:[#allocation2 + $0x22] sm:$0xff] }
  0xf3   : > { %v808_v41 = vld [vmem:[#allocation2 + $0x72] sm:$0xff]  ;;  %v805_v42 = vld [vmem:[#allocation2 + $0x42] sm:$0xff] }
  0xf4   : > { %v807_v43 = vld [vmem:[#allocation2 + $0x62] sm:$0xff] }
  0xf5   : > { %460 = vrot.lane.b32.xlu1 %v1691_v25, %s1552_s18  ;;  %v888_v44 = vld [vmem:[#allocation2 + $0x82] sm:$0xff] }
  0xf6   : > { %458 = vrot.lane.b32.xlu0 %v1693_v26, %s1552_s18 }
  0xf9   : > { %497 = vrot.lane.b32.xlu1 %v1699_v27, %s1553_s25 }
  0xfa   : > { %495 = vrot.lane.b32.xlu0 %v1701_v28, %s1553_s25 }
  0xfd   : > { %501 = vrot.lane.b32.xlu1 %v1707_v29, %s1553_s25 }
  0xfe   : > { %499 = vrot.lane.b32.xlu0 %v1709_v30, %s1553_s25 }
 0x101   : > { %505 = vrot.lane.b32.xlu1 %v1715_v31, %s1553_s25 }
 0x102   : > { %503 = vrot.lane.b32.xlu0 %v1717_v32, %s1553_s25 }
 0x105   : > { %509 = vrot.lane.b32.xlu1 %v486_v33, %s1553_s25 }
 0x106   : > { %507 = vrot.lane.b32.xlu0 %v1723_v34, %s1553_s25 }
 0x109   : > { %545 = vrot.lane.b32.xlu1 %v1667_v19, %s1554_s26 }
 0x10a   : > { %543 = vrot.lane.b32.xlu0 %v1677_v22, %s1554_s26 }
 0x10d   : > { %549 = vrot.lane.b32.xlu1 %v1685_v24, %s1554_s26 }
 0x10e   : > { %547 = vrot.lane.b32.xlu0 %v1675_v21, %s1554_s26 }
 0x111   : > { %553 = vrot.lane.b32.xlu1 %v1693_v26, %s1554_s26 }
 0x112   : > { %551 = vrot.lane.b32.xlu0 %v1683_v23, %s1554_s26 }
 0x115   : > { %557 = vrot.lane.b32.xlu1 %v534_v35, %s1554_s26 }
 0x116   : > { %555 = vrot.lane.b32.xlu0 %v1691_v25, %s1554_s26 }
 0x119   : > { %817 = vrot.lane.b32.xlu1 %v801_v36, %s1552_s18 }
 0x11a   : > { %823 = vrot.lane.b32.xlu0 %v804_v37, %s1552_s18 }
 0x11d   : > { %819 = vrot.lane.b32.xlu1 %v802_v38, %s1552_s18 }
 0x11e   : > { %827 = vrot.lane.b32.xlu0 %v806_v39, %s1552_s18 }
 0x121   : > { %821 = vrot.lane.b32.xlu1 %v803_v40, %s1552_s18 }
 0x122   : > { %831 = vrot.lane.b32.xlu0 %v808_v41, %s1552_s18 }
 0x125   : > { %825 = vrot.lane.b32.xlu1 %v805_v42, %s1552_s18 }
 0x126   : > { %851 = vrot.lane.b32.xlu0 %v1667_v19, %s1553_s25 }
 0x129   : > { %829 = vrot.lane.b32.xlu1 %v807_v43, %s1552_s18 }
 0x12a   : > { %855 = vrot.lane.b32.xlu0 %v1685_v24, %s1553_s25 }
 0x12d   : > { %849 = vrot.lane.b32.xlu1 %v1677_v22, %s1553_s25 }
 0x12e   : > { %859 = vrot.lane.b32.xlu0 %v1693_v26, %s1553_s25 }
 0x131   : > { %853 = vrot.lane.b32.xlu1 %v1675_v21, %s1553_s25 }
 0x132   : > { %863 = vrot.lane.b32.xlu0 %v534_v35, %s1553_s25 }
 0x135   : > { %857 = vrot.lane.b32.xlu1 %v1683_v23, %s1553_s25 }
 0x136   : > { %899 = vrot.lane.b32.xlu0 %v803_v40, %s1554_s26 }
 0x139   : > { %861 = vrot.lane.b32.xlu1 %v1691_v25, %s1553_s25 }
 0x13a   : > { %903 = vrot.lane.b32.xlu0 %v805_v42, %s1554_s26 }
 0x13d   : > { %897 = vrot.lane.b32.xlu1 %v802_v38, %s1554_s26 }
 0x13e   : > { %907 = vrot.lane.b32.xlu0 %v807_v43, %s1554_s26 }
 0x141   : > { %901 = vrot.lane.b32.xlu1 %v804_v37, %s1554_s26  ;;  %v617_v37 = vlaneseq }
 0x142   : > { %911 = vrot.lane.b32.xlu0 %v888_v44, %s1554_s26 }
 0x145   : > { %905 = vrot.lane.b32.xlu1 %v806_v39, %s1554_s26  ;;  %v1796_v39 = vshrl.u32 %v617_v37, 7 }
 0x149   : > { %909 = vrot.lane.b32.xlu1 %v808_v41, %s1554_s26 }
 0x15b   : > { %v451_v49 = vpop.permute.xlu1 %450 }
 0x15c   : > { %v1782_v50 = vpop.permute.xlu0 %446  ;;  %v472_v4 = vadd.f32 %v1699_v27, %v451_v49 }
 0x15f   : > { %v453_v51 = vpop.permute.xlu1 %452 }
 0x160   : > { %v449_v52 = vpop.permute.xlu0 %448  ;;  %v473_v5 = vadd.f32 %v1709_v30, %v453_v51  ;;  %v618_v51 = vand.u32 127, %v617_v37 }
 0x161   : > { %v471_v3 = vadd.f32 %v1701_v28, %v449_v52 }
 0x163   : > { %v457_v53 = vpop.permute.xlu1 %456 }
 0x164   : > { %v455_v54 = vpop.permute.xlu0 %454  ;;  %v475_v8 = vadd.f32 %v1717_v32, %v457_v53 }
 0x165   : > { %v474_v9 = vadd.f32 %v1707_v29, %v455_v54 }
 0x167   : > { %v461_v55 = vpop.permute.xlu1 %460 }
 0x168   : > { %v459_v56 = vpop.permute.xlu0 %458  ;;  %v477_v27 = vadd.f32 %v1723_v34, %v461_v55 }
 0x169   : > { %v476_v30 = vadd.f32 %v1715_v31, %v459_v56 }
 0x16b   : > { %v498_v57 = vpop.permute.xlu1 %497 }
 0x16c   : > { %v1784_v58 = vpop.permute.xlu0 %495  ;;  %v520_v11 = vadd.f32 %v498_v57, %v471_v3 }
 0x16f   : > { %v502_v59 = vpop.permute.xlu1 %501 }
 0x170   : > { %v500_v60 = vpop.permute.xlu0 %499  ;;  %v522_v12 = vadd.f32 %v502_v59, %v473_v5 }
 0x171   : > { %v521_v13 = vadd.f32 %v500_v60, %v472_v4  ;;  %v1805_v60 = vsub.s32 %v618_v51, %v1796_v39 }
 0x173   : > { %v506_v61 = vpop.permute.xlu1 %505 }
 0x174   : > { %v504_v62 = vpop.permute.xlu0 %503  ;;  %v524_v14 = vadd.f32 %v506_v61, %v475_v8 }
 0x175   : > { %v523_v15 = vadd.f32 %v504_v62, %v474_v9 }
 0x177   : > { %v510_v63 = vpop.permute.xlu1 %509 }
 0x178   : > { %v508_v0 = vpop.permute.xlu0 %507  ;;  %v526_v32 = vadd.f32 %v510_v63, %v477_v27  ;;  %v1809_v63 = vrot.slane %v1778_v47, %v1805_v60 }
 0x179   : > { %v525_v38 = vadd.f32 %v508_v0, %v476_v30 }
 0x17b   : > { %v546_v1 = vpop.permute.xlu1 %545 }
 0x17c   : > { %v1786_v2 = vpop.permute.xlu0 %543  ;;  %v568_v16 = vadd.f32 %v546_v1, %v520_v11 }
 0x17e   : > { %v582_v29 = vadd.f32 %v1655_v10, %v568_v16 }
 0x17f   : > { %v550_v6 = vpop.permute.xlu1 %549 }
 0x180   : > { %v548_v7 = vpop.permute.xlu0 %547  ;;  %v570_v17 = vadd.f32 %v550_v6, %v522_v12  ;;  %v598_v52 = vmul.f32 0.01, %v582_v29  ;;  %vm590_vm4 = vcmp.gt.f32.partialorder %v582_v29, 0.0 }
 0x181   : > { %v569_v18 = vadd.f32 %v548_v7, %v521_v13 }
 0x182   : > { %v584_v40 = vadd.f32 %v1655_v10, %v570_v17  ;;  %v1811_v1 = vsel %vm590_vm4, %v582_v29, %v598_v52 }
 0x183   : > { %v554_v33 = vpop.permute.xlu1 %553  ;;  %v583_v41 = vadd.f32 %v1655_v10, %v569_v18  ;;  %v1825_v12 = vmul.f32 %v1809_v63, %v1811_v1 }
 0x184   : > { %v552_v28 = vpop.permute.xlu0 %551  ;;  %v572_v35 = vadd.f32 %v554_v33, %v524_v14  ;;  %v600_v54 = vmul.f32 0.01, %v584_v40  ;;  %vm592_vm6 = vcmp.gt.f32.partialorder %v584_v40, 0.0 }
 0x185   : > { %v571_v36 = vadd.f32 %v552_v28, %v523_v15  ;;  %v599_v55 = vmul.f32 0.01, %v583_v41  ;;  %vm591_vm5 = vcmp.gt.f32.partialorder %v583_v41, 0.0 }
 0x186   : > { %v586_v44 = vadd.f32 %v1655_v10, %v572_v35  ;;  %v1815_v7 = vsel %vm592_vm6, %v584_v40, %v600_v54  ;;  %v964_v54 = vadd.s32 4294967264, %v618_v51  ;;  %vm770_vm6 = vcmask 15360  }
 0x187   : > { %v558_v42 = vpop.permute.xlu1 %557  ;;  %v585_v34 = vadd.f32 %v1655_v10, %v571_v36  ;;  %v1813_v6 = vsel %vm591_vm5, %v583_v41, %v599_v55  ;;  %v1835_v17 = vmul.f32 %v1809_v63, %v1815_v7  ;;  %vm761_vm5 = vcmask 7168  }
 0x188   : > { %v556_v43 = vpop.permute.xlu0 %555  ;;  %v574_v31 = vadd.f32 %v558_v42, %v526_v32  ;;  %v602_v61 = vmul.f32 0.01, %v586_v44  ;;  %vm594_vm7 = vcmp.gt.f32.partialorder %v586_v44, 0.0  ;;  %v1829_v13 = vmul.f32 %v1809_v63, %v1813_v6 }
 0x189   : > { %v573_v49 = vadd.f32 %v556_v43, %v525_v38  ;;  %v601_v62 = vmul.f32 0.01, %v585_v34  ;;  %vm593_vm9 = vcmp.gt.f32.partialorder %v585_v34, 0.0 }
 0x18a   : > { %v588_v53 = vadd.f32 %v1655_v10, %v574_v31  ;;  %v1817_v8 = vsel %vm594_vm7, %v586_v44, %v602_v61  ;;  %vm1254_vm7 = vcmask 23552  }
 0x18b   : > { %v587_v56 = vadd.f32 %v1655_v10, %v573_v49  ;;  %v818_v57 = vpop.permute.xlu1 %817  ;;  %v1819_v9 = vsel %vm593_vm9, %v585_v34, %v601_v62  ;;  %v1843_v33 = vmul.f32 %v1809_v63, %v1817_v8 }
 0x18c   : > { %v824_v59 = vpop.permute.xlu0 %823  ;;  %v604_v0 = vmul.f32 0.01, %v588_v53  ;;  %vm596_vm8 = vcmp.gt.f32.partialorder %v588_v53, 0.0  ;;  %v1839_v18 = vmul.f32 %v1809_v63, %v1819_v9  ;;  %v841_v49 = vadd.f32 %v818_v57, %v1669_v20 }
 0x18d   : > { %v603_v3 = vmul.f32 0.01, %v587_v56  ;;  %vm595_vm10 = vcmp.gt.f32.partialorder %v587_v56, 0.0  ;;  %v844_v55 = vadd.f32 %v824_v59, %v1675_v21 }
 0x18e   : > { %v1821_v11 = vsel %vm596_vm8, %v588_v53, %v604_v0  ;;  %vm1263_vm8 = vcmask 48128  }
 0x18f   : > { %v820_v4 = vpop.permute.xlu1 %819  ;;  %v1831_v16 = vsel %vm595_vm10, %v587_v56, %v603_v3  ;;  %v1851_v27 = vmul.f32 %v1809_v63, %v1821_v11 }
 0x190   : > { %v828_v5 = vpop.permute.xlu0 %827  ;;  %v1847_v28 = vmul.f32 %v1809_v63, %v1831_v16  ;;  %v842_v43 = vadd.f32 %v820_v4, %v1677_v22 }
 0x191   : > { %2123 = vst [vmem:[#allocation3_spill] sm:$0xff] %v1851_v27 }
 0x193   : > { %v822_v14 = vpop.permute.xlu1 %821 }
 0x194   : > { %v832_v15 = vpop.permute.xlu0 %831  ;;  %v843_v3 = vadd.f32 %v822_v14, %v1667_v19  ;;  %v846_v14 = vadd.f32 %v828_v5, %v1683_v23 }
 0x195   : > { %v848_v27 = vadd.f32 %v832_v15, %v1691_v25 }
 0x197   : > { %v826_v30 = vpop.permute.xlu1 %825 }
 0x198   : > { %v852_v35 = vpop.permute.xlu0 %851  ;;  %v845_v21 = vadd.f32 %v826_v30, %v1685_v24 }
 0x199   : > { %v874_v44 = vadd.f32 %v852_v35, %v842_v43  ;;  %v967_v35 = vsub.s32 %v964_v54, %v1796_v39 }
 0x19b   : > { %v830_v36 = vpop.permute.xlu1 %829 }
 0x19c   : > { %v856_v37 = vpop.permute.xlu0 %855 }
 0x19d   : > { %v876_v22 = vadd.f32 %v856_v37, %v844_v55 }
 0x19f   : > { %v850_v32 = vpop.permute.xlu1 %849 }
 0x1a0   : > { %v860_v38 = vpop.permute.xlu0 %859  ;;  %v873_v53 = vadd.f32 %v850_v32, %v841_v49 }
 0x1a3   : > { %v854_v29 = vpop.permute.xlu1 %853 }
 0x1a4   : > { %v864_v40 = vpop.permute.xlu0 %863  ;;  %v875_v20 = vadd.f32 %v854_v29, %v843_v3 }
 0x1a5   : > { %v880_v57 = vadd.f32 %v864_v40, %v848_v27  ;;  %v847_v40 = vadd.f32 %v830_v36, %v1693_v26 }
 0x1a7   : > { %v858_v41 = vpop.permute.xlu1 %857 }
 0x1a8   : > { %v900_v42 = vpop.permute.xlu0 %899  ;;  %v877_v15 = vadd.f32 %v858_v41, %v845_v21 }
 0x1a9   : > { %v922_v52 = vadd.f32 %v900_v42, %v874_v44  ;;  %v1863_v44 = vrot.slane %v1776_v46, %v967_v35 }
 0x1ab   : > { %v862_v34 = vpop.permute.xlu1 %861  ;;  %v933_v62 = vadd.f32 %v1780_v48, %v922_v52 }
 0x1ac   : > { %v904_v31 = vpop.permute.xlu0 %903  ;;  %v879_v5 = vadd.f32 %v862_v34, %v847_v40 }
 0x1ad   : > { %v924_v32 = vadd.f32 %v904_v31, %v876_v22  ;;  %v949_v59 = vmul.f32 0.01, %v933_v62  ;;  %vm941_vm12 = vcmp.gt.f32.partialorder %v933_v62, 0.0  ;;  %v878_v31 = vadd.f32 %v860_v38, %v846_v14 }
 0x1af   : > { %v898_v56 = vpop.permute.xlu1 %897  ;;  %v935_v27 = vadd.f32 %v1780_v48, %v924_v32  ;;  %v1871_v52 = vsel %vm941_vm12, %v933_v62, %v949_v59 }
 0x1b0   : > { %v908_v61 = vpop.permute.xlu0 %907  ;;  %v921_v0 = vadd.f32 %v898_v56, %v873_v53  ;;  %v977_v26 = vmul.f32 %v1863_v44, %v1871_v52 }
 0x1b1   : > { %v951_v41 = vmul.f32 0.01, %v935_v27  ;;  %v926_v54 = vadd.f32 %v908_v61, %v878_v31  ;;  %vm943_vm15 = vcmp.gt.f32.partialorder %v935_v27, 0.0 }
 0x1b2   : > { %v932_v4 = vadd.f32 %v1780_v48, %v921_v0 }
 0x1b3   : > { %v902_v51 = vpop.permute.xlu1 %901  ;;  %v937_v61 = vadd.f32 %v1780_v48, %v926_v54 }
 0x1b4   : > { %v912_v42 = vpop.permute.xlu0 %911  ;;  %vm940_vm11 = vcmp.gt.f32.partialorder %v932_v4, 0.0  ;;  %v948_v43 = vmul.f32 0.01, %v932_v4  ;;  %v923_v19 = vadd.f32 %v902_v51, %v875_v20  ;;  %v959_v20 = vsel %vm943_vm15, %v935_v27, %v951_v41 }
 0x1b5   : > { %v928_v25 = vadd.f32 %v912_v42, %v880_v57  ;;  %v1043_v57 = vrot.slane %v1774_v45, %v967_v35  ;;  %v979_v42 = vmul.f32 %v1863_v44, %v959_v20  ;;  %v953_v21 = vmul.f32 0.01, %v937_v61 }
 0x1b6   : > { %v956_v39 = vsel %vm940_vm11, %v932_v4, %v948_v43  ;;  %v934_v37 = vadd.f32 %v1780_v48, %v923_v19  ;;  %v1118_v43 = vrot.slane %v1778_v47, %v967_v35  ;;  %vm945_vm2 = vcmp.gt.f32.partialorder %v937_v61, 0.0 }
 0x1b7   : > { %v939_v29 = vadd.f32 %v1780_v48, %v928_v25  ;;  %v906_v24 = vpop.permute.xlu1 %905  ;;  %v976_v30 = vmul.f32 %v1863_v44, %v956_v39  ;;  %v961_v25 = vsel %vm945_vm2, %v937_v61, %v953_v21 }
 0x1b8   : > { %v925_v49 = vadd.f32 %v906_v24, %v877_v15  ;;  %vm942_vm13 = vcmp.gt.f32.partialorder %v934_v37, 0.0  ;;  %v950_v53 = vmul.f32 0.01, %v934_v37  ;;  %v981_v15 = vmul.f32 %v1863_v44, %v961_v25 }
 0x1b9   : > { %vm947_vm14 = vcmp.gt.f32.partialorder %v939_v29, 0.0  ;;  %v955_v23 = vmul.f32 0.01, %v939_v29  ;;  %992 = vrot.lane.b32.xlu1 %v976_v30, %s1555_s27  ;;  %v1054_v30 = vmul.f32 %v1043_v57, %v959_v20  ;;  %v1056_v40 = vmul.f32 %v1043_v57, %v961_v25 }
 0x1ba   : > { %v936_v36 = vadd.f32 %v1780_v48, %v925_v49  ;;  %v958_v0 = vsel %vm942_vm13, %v934_v37, %v950_v53  ;;  %v1051_v37 = vmul.f32 %v1043_v57, %v956_v39  ;;  %v622_v53 = vrot.slane %v1776_v46, %v1805_v60 }
 0x1bb   : > { %v910_v55 = vpop.permute.xlu1 %909  ;;  %v1874_v56 = vsel %vm947_vm14, %v939_v29, %v955_v23  ;;  %v978_v3 = vmul.f32 %v1863_v44, %v958_v0  ;;  %v1128_v14 = vmul.f32 %v1118_v43, %v958_v0  ;;  %v1052_v29 = vmul.f32 %v1043_v57, %v1871_v52 }
 0x1bc   : > { %v927_v38 = vadd.f32 %v910_v55, %v879_v5  ;;  %v983_v62 = vmul.f32 %v1863_v44, %v1874_v56  ;;  %v952_v22 = vmul.f32 0.01, %v936_v36  ;;  %vm944_vm1 = vcmp.gt.f32.partialorder %v936_v36, 0.0 }
 0x1bd   : > { %994 = vrot.lane.b32.xlu1 %v977_v26, %s1555_s27  ;;  %v1053_v24 = vmul.f32 %v1043_v57, %v958_v0  ;;  %v1058_v31 = vmul.f32 %v1043_v57, %v1874_v56  ;;  %v1127_v5 = vmul.f32 %v1118_v43, %v1871_v52  ;;  %v637_v41 = vmul.f32 %v622_v53, %v1811_v1 }
 0x1be   : > { %v938_v34 = vadd.f32 %v1780_v48, %v927_v38  ;;  %1006 = vrot.lane.b32.xlu0 %v983_v62, %s1555_s27  ;;  %v960_v59 = vsel %vm944_vm1, %v936_v36, %v952_v22  ;;  %v1126_v48 = vmul.f32 %v1118_v43, %v956_v39  ;;  %v422_v39 = vld [vmem:[#allocation2] sm:$0xff]  ;;  %v1129_v26 = vmul.f32 %v1118_v43, %v959_v20 }
 0x1bf   : > { %v980_v19 = vmul.f32 %v1863_v44, %v960_v59  ;;  %v1130_v47 = vmul.f32 %v1118_v43, %v960_v59  ;;  %v470_v49 = vadd.f32 %v1782_v50, %v422_v39  ;;  %v648_v55 = vsel %vm644_vm3, %v637_v41, 0.0 }
 0x1c0   : > { %vm946_vm0 = vcmp.gt.f32.partialorder %v938_v34, 0.0  ;;  %v954_v4 = vmul.f32 0.01, %v938_v34  ;;  %v639_v50 = vmul.f32 %v622_v53, %v1815_v7  ;;  %v1131_v52 = vmul.f32 %v1118_v43, %v961_v25 }
 0x1c1   : > { %996 = vrot.lane.b32.xlu1 %v978_v3, %s1555_s27  ;;  %v519_v23 = vadd.f32 %v1784_v58, %v470_v49  ;;  %v641_v36 = vmul.f32 %v622_v53, %v1817_v8  ;;  %v1133_v62 = vmul.f32 %v1118_v43, %v1874_v56  ;;  %v643_v0 = vmul.f32 %v622_v53, %v1821_v11 }
 0x1c2   : > { %v962_v32 = vsel %vm946_vm0, %v938_v34, %v954_v4  ;;  %v654_v58 = vsel %vm644_vm3, %v639_v50, 0.0  ;;  %v675_v34 = vrot.slane %v1774_v45, %v1805_v60 }
 0x1c3   : > { %v1057_v51 = vmul.f32 %v1043_v57, %v962_v32  ;;  %v982_v35 = vmul.f32 %v1863_v44, %v962_v32  ;;  %v1132_v27 = vmul.f32 %v1118_v43, %v962_v32  ;;  %v1055_v44 = vmul.f32 %v1043_v57, %v960_v59 }
 0x1c4   : > { %v567_v54 = vadd.f32 %v1786_v2, %v519_v23  ;;  %v660_v2 = vsel %vm644_vm3, %v641_v36, 0.0  ;;  %v666_v61 = vsel %vm644_vm3, %v643_v0, 0.0  ;;  %v684_v4 = vmul.f32 %v675_v34, %v1811_v1 }
 0x1c5   : > { %1079 = vrot.lane.b32.xlu0 %v1057_v51, %s1555_s27  ;;  %998 = vrot.lane.b32.xlu1 %v979_v42, %s1555_s27  ;;  %v685_v20 = vmul.f32 %v675_v34, %v1813_v6  ;;  %v686_v45 = vmul.f32 %v675_v34, %v1815_v7  ;;  %v688_v32 = vmul.f32 %v675_v34, %v1817_v8 }
 0x1c6   : > { %v581_v46 = vadd.f32 %v1655_v10, %v567_v54  ;;  %v694_v56 = vsel %vm644_vm3, %v684_v4, 0.0  ;;  %v689_v1 = vmul.f32 %v675_v34, %v1831_v16  ;;  %v690_v21 = vmul.f32 %v675_v34, %v1821_v11 }
 0x1c7   : > { %v697_v57 = vsel %vm644_vm3, %v685_v20, 0.0  ;;  %v700_v60 = vsel %vm644_vm3, %v686_v45, 0.0  ;;  %v706_v51 = vsel %vm644_vm3, %v688_v32, 0.0 }
 0x1c8   : > { %v597_v38 = vmul.f32 0.01, %v581_v46  ;;  %vm589_vm4 = vcmp.gt.f32.partialorder %v581_v46, 0.0  ;;  %v709_v42 = vsel %vm644_vm3, %v689_v1, 0.0  ;;  %v712_v59 = vsel %vm644_vm3, %v690_v21, 0.0 }
 0x1c9   : > { %1142 = vrot.lane.b32.xlu0 %v1126_v48, %s1555_s27  ;;  %1000 = vrot.lane.b32.xlu1 %v980_v19, %s1555_s27  ;;  %v638_v19 = vmul.f32 %v622_v53, %v1813_v6 }
 0x1ca   : > { %v605_v10 = vsel %vm589_vm4, %v581_v46, %v597_v38 }
 0x1cb   : > { %v683_v3 = vmul.f32 %v675_v34, %v605_v10  ;;  %v729_v7 = vmul.f32 %v1809_v63, %v605_v10  ;;  %v636_v43 = vmul.f32 %v622_v53, %v605_v10  ;;  %v651_v25 = vsel %vm644_vm3, %v638_v19, 0.0 }
 0x1cc   : > { %v746_v19 = vsel %vm644_vm3, %v1835_v17, 0.0 }
 0x1cd   : > { %1146 = vrot.lane.b32.xlu0 %v1128_v14, %s1555_s27  ;;  %1002 = vrot.lane.b32.xlu1 %v981_v15, %s1555_s27  ;;  %v691_v22 = vsel %vm644_vm3, %v683_v3, 0.0  ;;  %v737_v48 = vsel %vm644_vm3, %v729_v7, 0.0  ;;  %v645_v8 = vsel %vm644_vm3, %v636_v43, 0.0  ;;  %v640_v14 = vmul.f32 %v622_v53, %v1819_v9 }
 0x1ce   : > { %v642_v15 = vmul.f32 %v622_v53, %v1831_v16 }
 0x1cf   : > { %v657_v11 = vsel %vm644_vm3, %v640_v14, 0.0  ;;  %v752_v14 = vsel %vm644_vm3, %v1843_v33, 0.0 }
 0x1d1   : > { %1150 = vrot.lane.b32.xlu0 %v1130_v47, %s1555_s27  ;;  %1004 = vrot.lane.b32.xlu1 %v982_v35, %s1555_s27  ;;  %v663_v35 = vsel %vm644_vm3, %v642_v15, 0.0 }
 0x1d5   : > { %1154 = vrot.lane.b32.xlu0 %v1132_v27, %s1555_s27  ;;  %1067 = vrot.lane.b32.xlu1 %v1051_v37, %s1555_s27  ;;  %v687_v27 = vmul.f32 %v675_v34, %v1819_v9 }
 0x1d7   : > { %v703_v37 = vsel %vm644_vm3, %v687_v27, 0.0 }
 0x1d9   : > { %1069 = vrot.lane.b32.xlu1 %v1052_v29, %s1555_s27 }
 0x1dd   : > { %1071 = vrot.lane.b32.xlu1 %v1053_v24, %s1555_s27 }
 0x1e1   : > { %1073 = vrot.lane.b32.xlu1 %v1054_v30, %s1555_s27 }
 0x1e5   : > { %1075 = vrot.lane.b32.xlu1 %v1055_v44, %s1555_s27 }
 0x1e9   : > { %1077 = vrot.lane.b32.xlu1 %v1056_v40, %s1555_s27 }
 0x1ed   : > { %1081 = vrot.lane.b32.xlu1 %v1058_v31, %s1555_s27 }
 0x1f1   : > { %1144 = vrot.lane.b32.xlu1 %v1127_v5, %s1555_s27 }
 0x1f4   : > { %649 = vadd.xlane.f32.xlu0 %v648_v55 }
 0x1f5   : > { %1148 = vrot.lane.b32.xlu1 %v1129_v26, %s1555_s27 }
 0x1f8   : > { %655 = vadd.xlane.f32.xlu0 %v654_v58 }
 0x1f9   : > { %1152 = vrot.lane.b32.xlu1 %v1131_v52, %s1555_s27 }
 0x1fc   : > { %661 = vadd.xlane.f32.xlu0 %v660_v2 }
 0x1fd   : > { %1156 = vrot.lane.b32.xlu1 %v1133_v62, %s1555_s27 }
 0x200   : > { %667 = vadd.xlane.f32.xlu0 %v666_v61 }
 0x204   : > { %692 = vadd.xlane.f32.xlu0 %v691_v22 }
 0x208   : > { %695 = vadd.xlane.f32.xlu0 %v694_v56 }
 0x20c   : > { %698 = vadd.xlane.f32.xlu0 %v697_v57 }
 0x210   : > { %701 = vadd.xlane.f32.xlu0 %v700_v60 }
 0x214   : > { %707 = vadd.xlane.f32.xlu0 %v706_v51 }
 0x218   : > { %710 = vadd.xlane.f32.xlu0 %v709_v42 }
 0x21c   : > { %713 = vadd.xlane.f32.xlu0 %v712_v59 }
 0x220   : > { %738 = vadd.xlane.f32.xlu0 %v737_v48  ;;  %v740_v48 = vsel %vm644_vm3, %v1825_v12, 0.0  ;;  %v755_v12 = vsel %vm644_vm3, %v1847_v28, 0.0 }
 0x221   : > { %646 = vadd.xlane.f32.xlu1 %v645_v8  ;;  %v743_v8 = vsel %vm644_vm3, %v1829_v13, 0.0 }
 0x225   : > { %652 = vadd.xlane.f32.xlu1 %v651_v25  ;;  %v749_v25 = vsel %vm644_vm3, %v1839_v18, 0.0 }
 0x229   : > { %658 = vadd.xlane.f32.xlu1 %v657_v11  ;;  %v2124_v11 = vld [vmem:[#allocation3_spill] sm:$0xff] }
 0x22a   : > { %v758_v15 = vsel %vm644_vm3, %v2124_v11, 0.0 }
 0x22b   : > { %v993_v63 = vpop.permute.xlu1 %992 }
 0x22c   : > { %v1016_v47 = vsel %vm644_vm3, %v993_v63, 0.0 }
 0x22d   : > { %1017 = vadd.xlane.f32.xlu0 %v1016_v47  ;;  %664 = vadd.xlane.f32.xlu1 %v663_v35 }
 0x22f   : > { %v995_v6 = vpop.permute.xlu1 %994 }
 0x230   : > { %v1019_v24 = vsel %vm644_vm3, %v995_v6, 0.0  ;;  %v1007_v49 = vpop.permute.xlu0 %1006 }
 0x231   : > { %704 = vadd.xlane.f32.xlu1 %v703_v37  ;;  %v1037_v5 = vsel %vm644_vm3, %v1007_v49, 0.0 }
 0x233   : > { %v997_v29 = vpop.permute.xlu1 %996 }
 0x234   : > { %v1022_v30 = vsel %vm644_vm3, %v997_v29, 0.0 }
 0x235   : > { %1023 = vadd.xlane.f32.xlu0 %v1022_v30  ;;  %1020 = vadd.xlane.f32.xlu1 %v1019_v24 }
 0x237   : > { %v999_v16 = vpop.permute.xlu1 %998  ;;  %v1080_v58 = vpop.permute.xlu0 %1079 }
 0x238   : > { %v1025_v44 = vsel %vm644_vm3, %v999_v16, 0.0  ;;  %v1109_v10 = vsel %vm644_vm3, %v1080_v58, 0.0 }
 0x239   : > { %1026 = vadd.xlane.f32.xlu0 %v1025_v44 }
 0x23b   : > { %v1001_v40 = vpop.permute.xlu1 %1000  ;;  %v1143_v38 = vpop.permute.xlu0 %1142 }
 0x23c   : > { %v1028_v9 = vsel %vm644_vm3, %v1001_v40, 0.0  ;;  %v1166_v22 = vsel %vm644_vm3, %v1143_v38, 0.0 }
 0x23d   : > { %1029 = vadd.xlane.f32.xlu1 %v1028_v9 }
 0x23f   : > { %v1003_v39 = vpop.permute.xlu1 %1002  ;;  %v1147_v61 = vpop.permute.xlu0 %1146 }
 0x240   : > { %v1031_v31 = vsel %vm644_vm3, %v1003_v39, 0.0  ;;  %v1172_v57 = vsel %vm644_vm3, %v1147_v61, 0.0 }
 0x241   : > { %1032 = vadd.xlane.f32.xlu0 %v1031_v31 }
 0x243   : > { %v1005_v53 = vpop.permute.xlu1 %1004  ;;  %v1151_v56 = vpop.permute.xlu0 %1150 }
 0x244   : > { %v1034_v23 = vsel %vm644_vm3, %v1005_v53, 0.0  ;;  %v1178_v32 = vsel %vm644_vm3, %v1151_v56, 0.0 }
 0x245   : > { %1038 = vadd.xlane.f32.xlu0 %v1037_v5  ;;  %1035 = vadd.xlane.f32.xlu1 %v1034_v23 }
 0x247   : > { %v1068_v41 = vpop.permute.xlu1 %1067  ;;  %v1155_v1 = vpop.permute.xlu0 %1154 }
 0x248   : > { %v1091_v54 = vsel %vm644_vm3, %v1068_v41, 0.0  ;;  %v1184_v21 = vsel %vm644_vm3, %v1155_v1, 0.0 }
 0x249   : > { %1092 = vadd.xlane.f32.xlu1 %v1091_v54 }
 0x24b   : > { %v1070_v55 = vpop.permute.xlu1 %1069 }
 0x24c   : > { %v1094_v26 = vsel %vm644_vm3, %v1070_v55, 0.0 }
 0x24d   : > { %1095 = vadd.xlane.f32.xlu0 %v1094_v26 }
 0x24f   : > { %v1072_v50 = vpop.permute.xlu1 %1071 }
 0x250   : > { %v1097_v46 = vsel %vm644_vm3, %v1072_v50, 0.0 }
 0x251   : > { %1098 = vadd.xlane.f32.xlu1 %v1097_v46 }
 0x253   : > { %v1074_v52 = vpop.permute.xlu1 %1073 }
 0x254   : > { %v1100_v36 = vsel %vm644_vm3, %v1074_v52, 0.0 }
 0x255   : > { %1101 = vadd.xlane.f32.xlu0 %v1100_v36 }
 0x257   : > { %v1076_v2 = vpop.permute.xlu1 %1075 }
 0x258   : > { %v1103_v62 = vsel %vm644_vm3, %v1076_v2, 0.0 }
 0x259   : > { %1104 = vadd.xlane.f32.xlu1 %v1103_v62 }
 0x25b   : > { %v1078_v0 = vpop.permute.xlu1 %1077 }
 0x25c   : > { %v1106_v34 = vsel %vm644_vm3, %v1078_v0, 0.0 }
 0x25d   : > { %1107 = vadd.xlane.f32.xlu0 %v1106_v34  ;;  %1110 = vadd.xlane.f32.xlu1 %v1109_v10 }
 0x25f   : > { %v1082_v3 = vpop.permute.xlu1 %1081 }
 0x260   : > { %v1112_v4 = vsel %vm644_vm3, %v1082_v3, 0.0 }
 0x261   : > { %1113 = vadd.xlane.f32.xlu0 %v1112_v4  ;;  %1167 = vadd.xlane.f32.xlu1 %v1166_v22 }
 0x263   : > { %v1145_v20 = vpop.permute.xlu1 %1144 }
 0x264   : > { %v1169_v45 = vsel %vm644_vm3, %v1145_v20, 0.0  ;;  %v2024_v20 = vld [vmem:[%s2121_s4] ss:$0 sm:$0xff] }
 0x265   : > { %1170 = vadd.xlane.f32.xlu0 %v1169_v45  ;;  %1173 = vadd.xlane.f32.xlu1 %v1172_v57 }
 0x267   : > { %v1149_v60 = vpop.permute.xlu1 %1148 }
 0x268   : > { %v1175_v51 = vsel %vm644_vm3, %v1149_v60, 0.0 }
 0x269   : > { %1176 = vadd.xlane.f32.xlu0 %v1175_v51  ;;  %1179 = vadd.xlane.f32.xlu1 %v1178_v32 }
 0x26b   : > { %v1153_v42 = vpop.permute.xlu1 %1152 }
 0x26c   : > { %v1181_v59 = vsel %vm644_vm3, %v1153_v42, 0.0 }
 0x26d   : > { %1182 = vadd.xlane.f32.xlu0 %v1181_v59  ;;  %1185 = vadd.xlane.f32.xlu1 %v1184_v21 }
 0x26f   : > { %v1157_v7 = vpop.permute.xlu1 %1156 }
 0x270   : > { %v1187_v43 = vsel %vm644_vm3, %v1157_v7, 0.0 }
 0x271   : > { %1188 = vadd.xlane.f32.xlu0 %v1187_v43  ;;  %741 = vadd.xlane.f32.xlu1 %v740_v48 }
 0x275   : > { %744 = vadd.xlane.f32.xlu0 %v743_v8  ;;  %747 = vadd.xlane.f32.xlu1 %v746_v19 }
 0x279   : > { %750 = vadd.xlane.f32.xlu0 %v749_v25  ;;  %753 = vadd.xlane.f32.xlu1 %v752_v14 }
 0x27d   : > { %v650_v13 = vpop.xlane.xlu0 %649  ;;  %756 = vadd.xlane.f32.xlu0 %v755_v12  ;;  %759 = vadd.xlane.f32.xlu1 %v758_v15 }
 0x281   : > { %v656_v17 = vpop.xlane.xlu0 %655 }
 0x285   : > { %v662_v63 = vpop.xlane.xlu0 %661 }
 0x289   : > { %v668_v47 = vpop.xlane.xlu0 %667 }
 0x28d   : > { %v693_v35 = vpop.xlane.xlu0 %692 }
 0x291   : > { %v696_v18 = vpop.xlane.xlu0 %695 }
 0x292   : > { %v1996_v27 = vsel %vm761_vm5, %v650_v13, %v696_v18 }
 0x295   : > { %v699_v33 = vpop.xlane.xlu0 %698 }
 0x299   : > { %v702_v6 = vpop.xlane.xlu0 %701 }
 0x29a   : > { %v1999_v37 = vsel %vm761_vm5, %v656_v17, %v702_v6 }
 0x29d   : > { %v708_v28 = vpop.xlane.xlu0 %707 }
 0x29e   : > { %v2002_v29 = vsel %vm761_vm5, %v662_v63, %v708_v28 }
 0x2a1   : > { %v711_v24 = vpop.xlane.xlu0 %710 }
 0x2a5   : > { %v714_v30 = vpop.xlane.xlu0 %713 }
 0x2a6   : > { %v2005_v16 = vsel %vm761_vm5, %v668_v47, %v714_v30 }
 0x2a9   : > { %v739_v40 = vpop.xlane.xlu0 %738 }
 0x2aa   : > { %v647_v44 = vpop.xlane.xlu1 %646 }
 0x2ab   : > { %v762_v9 = vsel %vm761_vm5, %v647_v44, %v693_v35 }
 0x2ac   : > { %v2009_v39 = vsel %vm770_vm6, %v762_v9, %v739_v40 }
 0x2ae   : > { %v653_v31 = vpop.xlane.xlu1 %652 }
 0x2af   : > { %v2012_v49 = vsel %vm761_vm5, %v653_v31, %v699_v33 }
 0x2b2   : > { %v659_v53 = vpop.xlane.xlu1 %658 }
 0x2b6   : > { %v665_v23 = vpop.xlane.xlu1 %664  ;;  %v1018_v55 = vpop.xlane.xlu0 %1017 }
 0x2b7   : > { %v2015_v5 = vsel %vm761_vm5, %v665_v23, %v711_v24 }
 0x2ba   : > { %v705_v41 = vpop.xlane.xlu1 %704 }
 0x2bb   : > { %v2018_v54 = vsel %vm761_vm5, %v659_v53, %v705_v41 }
 0x2be   : > { %v1024_v26 = vpop.xlane.xlu0 %1023  ;;  %v1021_v50 = vpop.xlane.xlu1 %1020 }
 0x2c2   : > { %v1027_v46 = vpop.xlane.xlu0 %1026 }
 0x2c6   : > { %v1030_v58 = vpop.xlane.xlu1 %1029 }
 0x2ca   : > { %v1033_v52 = vpop.xlane.xlu0 %1032 }
 0x2ce   : > { %v1036_v36 = vpop.xlane.xlu1 %1035  ;;  %v1039_v38 = vpop.xlane.xlu0 %1038 }
 0x2d2   : > { %v1093_v2 = vpop.xlane.xlu1 %1092 }
 0x2d3   : > { %v1190_v22 = vsel %vm761_vm5, %v1018_v55, %v1093_v2 }
 0x2d6   : > { %v1096_v62 = vpop.xlane.xlu0 %1095 }
 0x2d7   : > { %v1191_v60 = vsel %vm761_vm5, %v1021_v50, %v1096_v62 }
 0x2da   : > { %v1099_v0 = vpop.xlane.xlu1 %1098 }
 0x2db   : > { %v1192_v32 = vsel %vm761_vm5, %v1024_v26, %v1099_v0 }
 0x2de   : > { %v1102_v10 = vpop.xlane.xlu0 %1101 }
 0x2df   : > { %v1193_v43 = vsel %vm761_vm5, %v1027_v46, %v1102_v10 }
 0x2e2   : > { %v1105_v34 = vpop.xlane.xlu1 %1104 }
 0x2e3   : > { %v1194_v48 = vsel %vm761_vm5, %v1030_v58, %v1105_v34  ;;  %v785_v58 = vadd.f32 %v2024_v20, %v2009_v39 }
 0x2e6   : > { %v1108_v61 = vpop.xlane.xlu0 %1107  ;;  %v1111_v3 = vpop.xlane.xlu1 %1110 }
 0x2e7   : > { %v1195_v15 = vsel %vm761_vm5, %v1033_v52, %v1108_v61  ;;  %v1196_v13 = vsel %vm761_vm5, %v1036_v36, %v1111_v3 }
 0x2ea   : > { %v1114_v4 = vpop.xlane.xlu0 %1113  ;;  %v1168_v56 = vpop.xlane.xlu1 %1167 }
 0x2eb   : > { %v1198_v57 = vsel %vm770_vm6, %v1190_v22, %v1168_v56  ;;  %v1197_v6 = vsel %vm761_vm5, %v1039_v38, %v1114_v4 }
 0x2ec   : > { %v1206_v45 = vadd.f32 %v2024_v20, %v1198_v57 }
 0x2ee   : > { %1475 = vtanh.f32 %v1206_v45  ;;  %v1171_v51 = vpop.xlane.xlu0 %1170  ;;  %v1174_v1 = vpop.xlane.xlu1 %1173 }
 0x2ef   : > { %v1199_v42 = vsel %vm770_vm6, %v1191_v60, %v1171_v51  ;;  %v1200_v21 = vsel %vm770_vm6, %v1192_v32, %v1174_v1 }
 0x2f0   : > { %v1207_v59 = vadd.f32 %v2024_v20, %v1199_v42  ;;  %v1208_v7 = vadd.f32 %v2024_v20, %v1200_v21 }
 0x2f2   : > { %1477 = vtanh.f32 %v1207_v59  ;;  %v1177_v8 = vpop.xlane.xlu0 %1176  ;;  %v1180_v19 = vpop.xlane.xlu1 %1179 }
 0x2f3   : > { %v1201_v25 = vsel %vm770_vm6, %v1193_v43, %v1177_v8  ;;  %v1202_v14 = vsel %vm770_vm6, %v1194_v48, %v1180_v19  ;;  %1479 = vtanh.f32 %v1208_v7 }
 0x2f4   : > { %v1209_v12 = vadd.f32 %v2024_v20, %v1201_v25  ;;  %v1210_v11 = vadd.f32 %v2024_v20, %v1202_v14 }
 0x2f6   : > { %1481 = vtanh.f32 %v1209_v12  ;;  %v1183_v17 = vpop.xlane.xlu0 %1182  ;;  %v1186_v63 = vpop.xlane.xlu1 %1185 }
 0x2f7   : > { %v1203_v47 = vsel %vm770_vm6, %v1195_v15, %v1183_v17  ;;  %v1204_v35 = vsel %vm770_vm6, %v1196_v13, %v1186_v63  ;;  %1483 = vtanh.f32 %v1210_v11 }
 0x2f8   : > { %v1211_v18 = vadd.f32 %v2024_v20, %v1203_v47  ;;  %v1212_v33 = vadd.f32 %v2024_v20, %v1204_v35 }
 0x2fa   : > { %1485 = vtanh.f32 %v1211_v18  ;;  %v1189_v28 = vpop.xlane.xlu0 %1188  ;;  %v742_v26 = vpop.xlane.xlu1 %741 }
 0x2fb   : > { %v1476_v24 = vpop.eup %1475  ;;  %v1205_v30 = vsel %vm770_vm6, %v1197_v6, %v1189_v28  ;;  %1487 = vtanh.f32 %v1212_v33  ;;  %v772_v52 = vsel %vm770_vm6, %v1996_v27, %v742_v26 }
 0x2fc   : > { %v1213_v44 = vadd.f32 %v2024_v20, %v1205_v30  ;;  %1230 = vrot.lane.b32.xlu0 %v1476_v24, %s1556_s30  ;;  %v786_v38 = vadd.f32 %v2024_v20, %v772_v52 }
 0x2fe   : > { %1489 = vtanh.f32 %v1213_v44  ;;  %v745_v50 = vpop.xlane.xlu0 %744  ;;  %v748_v46 = vpop.xlane.xlu1 %747 }
 0x2ff   : > { %v1478_v40 = vpop.eup %1477  ;;  %1491 = vtanh.f32 %v785_v58  ;;  %v773_v2 = vsel %vm770_vm6, %v2012_v49, %v745_v50  ;;  %v774_v0 = vsel %vm770_vm6, %v1999_v37, %v748_v46 }
 0x300   : > { %1232 = vrot.lane.b32.xlu1 %v1478_v40, %s1556_s30  ;;  %v1480_v9 = vpop.eup %1479  ;;  %v787_v10 = vadd.f32 %v2024_v20, %v773_v2  ;;  %1493 = vtanh.f32 %v786_v38  ;;  %v788_v39 = vadd.f32 %v2024_v20, %v774_v0 }
 0x302   : > { %v751_v36 = vpop.xlane.xlu0 %750  ;;  %v754_v62 = vpop.xlane.xlu1 %753  ;;  %1495 = vtanh.f32 %v787_v10 }
 0x303   : > { %v1482_v31 = vpop.eup %1481  ;;  %v775_v27 = vsel %vm770_vm6, %v2018_v54, %v751_v36  ;;  %v776_v34 = vsel %vm770_vm6, %v2002_v29, %v754_v62  ;;  %1497 = vtanh.f32 %v788_v39 }
 0x304   : > { %1236 = vrot.lane.b32.xlu0 %v1482_v31, %s1556_s30  ;;  %1234 = vrot.lane.b32.xlu1 %v1480_v9, %s1556_s30  ;;  %v1484_v53 = vpop.eup %1483  ;;  %v789_v49 = vadd.f32 %v2024_v20, %v775_v27  ;;  %v790_v22 = vadd.f32 %v2024_v20, %v776_v34 }
 0x306   : > { %v757_v61 = vpop.xlane.xlu0 %756  ;;  %v760_v3 = vpop.xlane.xlu1 %759  ;;  %1499 = vtanh.f32 %v789_v49 }
 0x307   : > { %v1486_v23 = vpop.eup %1485  ;;  %v777_v37 = vsel %vm770_vm6, %v2015_v5, %v757_v61  ;;  %v778_v4 = vsel %vm770_vm6, %v2005_v16, %v760_v3  ;;  %1501 = vtanh.f32 %v790_v22 }
 0x308   : > { %1240 = vrot.lane.b32.xlu0 %v1486_v23, %s1556_s30  ;;  %1238 = vrot.lane.b32.xlu1 %v1484_v53, %s1556_s30  ;;  %v1488_v41 = vpop.eup %1487  ;;  %v791_v54 = vadd.f32 %v2024_v20, %v777_v37  ;;  %v792_v29 = vadd.f32 %v2024_v20, %v778_v4 }
 0x30a   : > { %1503 = vtanh.f32 %v791_v54 }
 0x30b   : > { %v1490_v55 = vpop.eup %1489  ;;  %1505 = vtanh.f32 %v792_v29 }
 0x30c   : > { %1244 = vrot.lane.b32.xlu0 %v1490_v55, %s1556_s30  ;;  %1242 = vrot.lane.b32.xlu1 %v1488_v41, %s1556_s30  ;;  %v1492_v5 = vpop.eup %1491 }
 0x30d   : > { %v1494_v57 = vpop.eup %1493 }
 0x30f   : > { %v1496_v20 = vpop.eup %1495 }
 0x310   : > { %v1498_v32 = vpop.eup %1497 }
 0x313   : > { %v1500_v59 = vpop.eup %1499 }
 0x314   : > { %v1502_v7 = vpop.eup %1501 }
 0x317   : > { %v1504_v25 = vpop.eup %1503 }
 0x318   : > { %v1506_v14 = vpop.eup %1505 }
 0x36e   : > { %v1231_v56 = vpop.permute.xlu0 %1230 }
 0x36f   : > { %v1255_v16 = vsel %vm1254_vm7, %v1492_v5, %v1231_v56 }
 0x370   : > { %1264 = vst.msk [vmem:[%s2075_s9] sm:$0xff] %vm1263_vm8, %v1255_v16 }
 0x372   : > { %v1233_v45 = vpop.permute.xlu1 %1232 }
 0x373   : > { %v1256_v60 = vsel %vm1254_vm7, %v1494_v57, %v1233_v45 }
 0x374   : > { %1265 = vst.msk [vmem:[%s2075_s9 + $0x8] sm:$0xff] %vm1263_vm8, %v1256_v60 }
 0x376   : > { %v1237_v51 = vpop.permute.xlu0 %1236  ;;  %v1235_v1 = vpop.permute.xlu1 %1234 }
 0x377   : > { %v1258_v42 = vsel %vm1254_vm7, %v1498_v32, %v1237_v51  ;;  %v1257_v21 = vsel %vm1254_vm7, %v1496_v20, %v1235_v1 }
 0x378   : > { %1267 = vst.msk [vmem:[%s2075_s9 + $0x18] sm:$0xff] %vm1263_vm8, %v1258_v42  ;;  %1266 = vst.msk [vmem:[%s2075_s9 + $0x10] sm:$0xff] %vm1263_vm8, %v1257_v21 }
 0x37a   : > { %v1241_v43 = vpop.permute.xlu0 %1240  ;;  %v1239_v48 = vpop.permute.xlu1 %1238 }
 0x37b   : > { %v1260_v8 = vsel %vm1254_vm7, %v1502_v7, %v1241_v43  ;;  %v1259_v19 = vsel %vm1254_vm7, %v1500_v59, %v1239_v48 }
 0x37c   : > { %1269 = vst.msk [vmem:[%s2075_s9 + $0x28] sm:$0xff] %vm1263_vm8, %v1260_v8  ;;  %1268 = vst.msk [vmem:[%s2075_s9 + $0x20] sm:$0xff] %vm1263_vm8, %v1259_v19 }
 0x37e   : > { %v1245_v12 = vpop.permute.xlu0 %1244  ;;  %v1243_v11 = vpop.permute.xlu1 %1242 }
 0x37f   : > { %v1262_v15 = vsel %vm1254_vm7, %v1506_v14, %v1245_v12  ;;  %v1261_v13 = vsel %vm1254_vm7, %v1504_v25, %v1243_v11 }
 0x380   : > { %1271 = vst.msk [vmem:[%s2075_s9 + $0x38] sm:$0xff] %vm1263_vm8, %v1262_v15  ;;  %1270 = vst.msk [vmem:[%s2075_s9 + $0x30] sm:$0xff] %vm1263_vm8, %v1261_v13 }
 0x381 PF: > { %s15_s22 = sadd.s32 1, %s1545_s22   ;;  %s2125_s18 = smov %s1537_s20 }
 0x382   : > { %p12_p7 = scmp.ge.s32.totalorder %s15_s22, 6   ;;  %s2126_s19 = smov %s1541_s21 }
 0x383   : > { %s2127_s20 = smov %s2130_s23  ;;  %s2128_s21 = smov %s2134_s24 }
 0x384   :  { %14 = sbr.rel (!%p12_p7) target bundleno = 3 (0x3), region = 76 }

</bundles_post_ra>
